<compile_context>
chip_gen: v7x
topology: tpu7x:2x2x1
jax: 0.10.0
libtpu: 0.0.40
codegen_flags: <defaults>
</compile_context>

<pallas_src>
import functools
import math

import jax
import jax.numpy as jnp
import numpy as np
from jax import lax
from jax.experimental import pallas as pl
from jax.experimental.pallas import tpu as pltpu

INF = 1.0e12


def _pointer_kernel(q_ref, k_ref, bq_ref, bk_ref, mcol_ref, mrow_ref,
                    out_ref, base_ref, *, heads, tq, tk, strip, tril_mask):
    q_off = pl.program_id(1) * tq
    k_off = pl.program_id(2) * tk
    out_dtype = out_ref.dtype
    m_row = mrow_ref[0]                                         # [1, TK]
    n_strips = tq // strip

    def masked_only():
        # tile entirely below the diagonal: every entry carries at least -INF
        m_col = mcol_ref[0]                                     # [TQ, 1]
        for s in range(n_strips):
            r0 = s * strip
            pen = (1.0 - m_col[r0:r0 + strip] * m_row) * INF + INF
            val = (-pen).astype(out_dtype)                      # [strip, TK]
            for h in range(heads):
                out_ref[0, h, r0:r0 + strip, :] = val

    def full_compute():
        # pairwise scores on the MXU; 1/sqrt(D) already folded into q
        base_ref[...] = lax.dot_general(
            q_ref[0], k_ref[0], (((1,), (1,)), ((), ())),
            preferred_element_type=jnp.float32)                 # [TQ, TK]
        m_col = mcol_ref[0]                                     # [TQ, 1]
        bq = bq_ref[0]                                          # [TQ, heads]
        bk = bk_ref[0]                                          # [heads, TK]
        col = lax.broadcasted_iota(jnp.int32, (1, tk), 1) + k_off
        for s in range(n_strips):
            r0 = s * strip
            pen = (1.0 - m_col[r0:r0 + strip] * m_row) * INF    # [strip, TK]
            if tril_mask:
                row = lax.broadcasted_iota(jnp.int32, (strip, 1), 0) + (q_off + r0)
                pen = pen + (row > col).astype(jnp.float32) * INF
            vals = base_ref[r0:r0 + strip, :] - pen             # [strip, TK]
            for h in range(heads):
                out_ref[0, h, r0:r0 + strip, :] = (
                    vals + bq[r0:r0 + strip, h:h + 1] + bk[h:h + 1, :]
                ).astype(out_dtype)

    if tril_mask:
        fully_masked = q_off >= k_off + tk
        pl.when(fully_masked)(masked_only)
        pl.when(jnp.logical_not(fully_masked))(full_compute)
    else:
        full_compute()


def _pick_tiles(n_pad, heads, head_size, vmem_limit):
    """Largest (TQ, TK) from {512,256,128} dividing n_pad that fits the budget."""
    cands = [c for c in (512, 256, 128) if n_pad % c == 0]
    if not cands:
        cands = [n_pad]
    best = (cands[-1], cands[-1])
    best_area = 0
    budget = 0.6 * vmem_limit
    for tq in cands:
        for tk in cands:
            out_b = 2 * heads * tq * tk * 4                     # double-buffered out
            in_b = 2 * 4 * ((tq + tk) * head_size + tq * heads
                            + heads * tk + tq + tk)             # double-buffered inputs
            scratch_b = tq * tk * 4
            if out_b + in_b + scratch_b > budget:
                continue
            area = tq * tk
            if area > best_area or (area == best_area and tq > best[0]):
                best, best_area = (tq, tk), area
    return best


def efficient_pointer_layer(x, mask, w1, b1, w2, b2, *, heads, head_size,
                            rope=True, tril_mask=True, out_dtype=jnp.float32):
    """x: [B, N, H] float, mask: [B, N] (0/1).  Returns [B, heads, N, N]."""
    x = x.astype(jnp.float32)
    w1 = w1.astype(jnp.float32); b1 = b1.astype(jnp.float32)
    w2 = w2.astype(jnp.float32); b2 = b2.astype(jnp.float32)
    B, N, H = x.shape
    D = head_size
    scale = 1.0 / math.sqrt(D)

    # ---- pad the sequence to a lane-friendly multiple of 128 --------------
    n_pad = max(128, ((N + 127) // 128) * 128)
    maskf = mask.astype(jnp.float32)
    if n_pad != N:
        x_p = jnp.pad(x, ((0, 0), (0, n_pad - N), (0, 0)))
        mask_p = jnp.pad(maskf, ((0, 0), (0, n_pad - N)))
    else:
        x_p, mask_p = x, maskf

    hp = lax.Precision.HIGHEST

    # ---- dense1 + RoPE + score scale (wrapper-side; computed exactly once) --
    out1 = jnp.einsum('bnh,hd->bnd', x_p, w1, precision=hp) + b1   # [B, Np, 2D]
    qw, kw = out1[..., 0::2], out1[..., 1::2]                      # [B, Np, D]
    if rope:
        pos = jnp.arange(n_pad, dtype=jnp.float32)
        idx = jnp.arange(D // 2, dtype=jnp.float32)
        theta = jnp.power(10000.0, -2.0 * idx / D)
        ang = pos[:, None] * theta[None, :]                        # [Np, D/2]
        cos_t = jnp.repeat(jnp.cos(ang), 2, axis=-1)[None]         # [1, Np, D]
        sin_t = jnp.repeat(jnp.sin(ang), 2, axis=-1)[None]

        def rot(t):
            return jnp.stack([-t[..., 1::2], t[..., 0::2]], axis=-1).reshape(t.shape)

        qw = qw * cos_t + rot(qw) * sin_t
        kw = kw * cos_t + rot(kw) * sin_t
    q = qw * scale                                                 # fold 1/sqrt(D)
    k = kw

    # ---- dense2 biases (the /2 folded in), broadcast-ready layouts ---------
    out2 = jnp.einsum('bnh,hd->bnd', x_p, w2, precision=hp) + b2   # [B, Np, 2*heads]
    bias_q = out2[..., 1::2] * 0.5                                 # [B, Np, heads] (query axis)
    bias_k = jnp.swapaxes(out2[..., 0::2] * 0.5, 1, 2)             # [B, heads, Np] (key axis)

    mask_col = mask_p[:, :, None]                                  # [B, Np, 1]
    mask_row = mask_p[:, None, :]                                  # [B, 1, Np]

    # ---- generation-aware VMEM budget & tiles -------------------------------
    try:
        vmem_cap = int(pltpu.get_tpu_info().vmem_capacity_bytes)
    except Exception:
        vmem_cap = 64 * 1024 * 1024
    vmem_limit = int(0.75 * vmem_cap)

    TQ, TK = _pick_tiles(n_pad, heads, D, vmem_limit)
    STRIP = 64 if TQ % 64 == 0 else TQ

    kern = functools.partial(_pointer_kernel, heads=heads, tq=TQ, tk=TK,
                             strip=STRIP, tril_mask=tril_mask)

    out = pl.pallas_call(
        kern,
        out_shape=jax.ShapeDtypeStruct((B, heads, n_pad, n_pad), out_dtype),
        grid_spec=pltpu.PrefetchScalarGridSpec(
            num_scalar_prefetch=0,
            grid=(B, n_pad // TQ, n_pad // TK),
            in_specs=[
                pl.BlockSpec((1, TQ, D), lambda b, qi, ki: (b, qi, 0)),      # q rows
                pl.BlockSpec((1, TK, D), lambda b, qi, ki: (b, ki, 0)),      # k rows
                pl.BlockSpec((1, TQ, heads), lambda b, qi, ki: (b, qi, 0)),  # query-axis bias
                pl.BlockSpec((1, heads, TK), lambda b, qi, ki: (b, 0, ki)),  # key-axis bias
                pl.BlockSpec((1, TQ, 1), lambda b, qi, ki: (b, qi, 0)),      # mask (query)
                pl.BlockSpec((1, 1, TK), lambda b, qi, ki: (b, 0, ki)),      # mask (key)
            ],
            out_specs=pl.BlockSpec((1, heads, TQ, TK),
                                   lambda b, qi, ki: (b, 0, qi, ki)),
            scratch_shapes=[pltpu.VMEM((TQ, TK), jnp.float32)],
        ),
        compiler_params=pltpu.CompilerParams(
            dimension_semantics=("parallel", "parallel", "parallel"),
            vmem_limit_bytes=vmem_limit),
    )(q, k, bias_q, bias_k, mask_col, mask_row)

    if n_pad != N:
        out = out[:, :, :N, :N]
    return out


def reference(x, mask, w1, b1, w2, b2, *, heads, head_size, inf=INF):
    """Pure-JAX transcription of the PyTorch forward, for verification."""
    B, N, H = x.shape
    D = head_size
    hp = jax.lax.Precision.HIGHEST
    out1 = jnp.einsum('bnh,hd->bnd', x, w1, precision=hp) + b1
    qw, kw = out1[..., 0::2], out1[..., 1::2]
    pos = jnp.arange(N, dtype=jnp.float32)
    idx = jnp.arange(D // 2, dtype=jnp.float32)
    theta = jnp.power(10000.0, -2.0 * idx / D)
    ang = pos[:, None] * theta[None, :]
    cos_pos = jnp.repeat(jnp.cos(ang), 2, axis=-1)[None]
    sin_pos = jnp.repeat(jnp.sin(ang), 2, axis=-1)[None]

    def rope(t):
        t2 = jnp.stack([-t[..., 1::2], t[..., 0::2]], axis=-1).reshape(t.shape)
        return t * cos_pos + t2 * sin_pos

    qw, kw = rope(qw), rope(kw)
    logits = jnp.einsum('bmd,bnd->bmn', qw, kw, precision=hp) / math.sqrt(D)
    od = jnp.einsum('bnh,hd->bnd', x, w2, precision=hp) + b2
    bias = jnp.swapaxes(od, 1, 2) / 2.0                            # [B, 2*heads, N]
    logits = logits[:, None] + bias[:, 0::2, None] + bias[:, 1::2, :, None]
    m = mask.astype(jnp.float32)
    m2 = m[:, None, :, None]
    logits = logits * m2 + (1 - m2) * (-inf)
    m3 = m[:, None, None, :]
    logits = logits * m3 + (1 - m3) * (-inf)
    tri = jnp.tril(jnp.ones((N, N), jnp.float32), -1)
    logits = logits - tri * inf
    return logits


def _run_case(key, B, N, H, heads, head_size, lengths):
    kx, kw1, kb1, kw2, kb2 = jax.random.split(key, 5)
    x = jax.random.normal(kx, (B, N, H), dtype=jnp.float32)
    w1 = 0.1 * jax.random.normal(kw1, (H, 2 * head_size), dtype=jnp.float32)
    b1 = 0.1 * jax.random.normal(kb1, (2 * head_size,), dtype=jnp.float32)
    w2 = 0.1 * jax.random.normal(kw2, (H, 2 * heads), dtype=jnp.float32)
    b2 = 0.1 * jax.random.normal(kb2, (2 * heads,), dtype=jnp.float32)
    lengths = jnp.asarray(lengths, dtype=jnp.int32)
    mask = (jnp.arange(N)[None, :] < lengths[:, None]).astype(jnp.float32)

    out = efficient_pointer_layer(x, mask, w1, b1, w2, b2,
                                  heads=heads, head_size=head_size,
                                  rope=True, tril_mask=True)
    out = jax.block_until_ready(out)
    ref = jax.block_until_ready(
        reference(x, mask, w1, b1, w2, b2, heads=heads, head_size=head_size))
    assert out.shape == (B, heads, N, N)
    np.testing.assert_allclose(np.asarray(out), np.asarray(ref), rtol=5e-3, atol=5e-3)


if __name__ == "__main__":
    key = jax.random.PRNGKey(0)
    k1, k2 = jax.random.split(key)

    # small case (pads N=8 -> 128, single tile per batch)
    _run_case(k1, B=2, N=8, H=32, heads=4, head_size=16, lengths=[8, 5])

    # multi-tile case (N=384 -> 3x3 tile grid, exercises the below-diagonal
    # fast path and the padding-mask interaction)
    _run_case(k2, B=1, N=384, H=32, heads=2, head_size=16, lengths=[300])

    print("KERNEL_OK")
</pallas_src>

<mosaic_0001>
module attributes {stable_mosaic.version = 11 : i64} {
  func.func @_pointer_kernel(%arg0: i32, %arg1: i32, %arg2: i32, %arg3: memref<1x128x16xf32, #tpu.memory_space<vmem>>, %arg4: memref<1x128x16xf32, #tpu.memory_space<vmem>>, %arg5: memref<1x128x4xf32, #tpu.memory_space<vmem>>, %arg6: memref<1x4x128xf32, #tpu.memory_space<vmem>>, %arg7: memref<1x128x1xf32, #tpu.memory_space<vmem>>, %arg8: memref<1x1x128xf32, #tpu.memory_space<vmem>>, %arg9: memref<1x4x128x128xf32, #tpu.memory_space<vmem>>, %arg10: memref<128x128xf32, #tpu.memory_space<vmem>>) attributes {dimension_semantics = [#tpu.dimension_semantics<parallel>, #tpu.dimension_semantics<parallel>, #tpu.dimension_semantics<parallel>], iteration_bounds = array<i64: 2, 1, 1>, scalar_prefetch = 0 : i64, scratch_operands = 1 : i64, tpu.core_type = #tpu.core_type<tc>, window_params = [{transform_indices = @transform_0, window_bounds = array<i64: 1, 128, 16>}, {transform_indices = @transform_1, window_bounds = array<i64: 1, 128, 16>}, {transform_indices = @transform_2, window_bounds = array<i64: 1, 128, 4>}, {transform_indices = @transform_3, window_bounds = array<i64: 1, 4, 128>}, {transform_indices = @transform_4, window_bounds = array<i64: 1, 128, 1>}, {transform_indices = @transform_5, window_bounds = array<i64: 1, 1, 128>}, {transform_indices = @transform_6, window_bounds = array<i64: 1, 4, 128, 128>}]} {
    %c128_i32 = arith.constant 128 : i32
    %0 = arith.muli %arg1, %c128_i32 : i32
    %c128_i32_0 = arith.constant 128 : i32
    %1 = arith.muli %arg2, %c128_i32_0 : i32
    %c0 = arith.constant 0 : index
    %c0_1 = arith.constant 0 : index
    %c0_2 = arith.constant 0 : index
    %2 = vector.load %arg8[%c0, %c0_1, %c0_2] : memref<1x1x128xf32, #tpu.memory_space<vmem>>, vector<1x1x128xf32>
    %3 = vector.shape_cast %2 : vector<1x1x128xf32> to vector<1x128xf32>
    %c128_i32_3 = arith.constant 128 : i32
    %4 = arith.addi %1, %c128_i32_3 : i32
    %5 = arith.cmpi sge, %0, %4 : i32
    %6 = arith.extui %5 : i1 to i32
    %c0_i32 = arith.constant 0 : i32
    %7 = arith.cmpi ne, %6, %c0_i32 : i32
    scf.if %7 {
      %c0_5 = arith.constant 0 : index
      %c0_6 = arith.constant 0 : index
      %c0_7 = arith.constant 0 : index
      %11 = vector.load %arg7[%c0_5, %c0_6, %c0_7] : memref<1x128x1xf32, #tpu.memory_space<vmem>>, vector<1x128x1xf32>
      %12 = vector.shape_cast %11 : vector<1x128x1xf32> to vector<128x1xf32>
      %13 = vector.extract_strided_slice %12 {offsets = [0, 0], sizes = [64, 1], strides = [1, 1]} : vector<128x1xf32> to vector<64x1xf32>
      %14 = vector.broadcast %13 : vector<64x1xf32> to vector<64x128xf32>
      %15 = vector.broadcast %3 : vector<1x128xf32> to vector<64x128xf32>
      %16 = arith.mulf %14, %15 : vector<64x128xf32>
      %cst = arith.constant 1.000000e+00 : f32
      %17 = vector.broadcast %cst : f32 to vector<64x128xf32>
      %18 = arith.subf %17, %16 : vector<64x128xf32>
      %cst_8 = arith.constant 9.99999995E+11 : f32
      %19 = vector.broadcast %cst_8 : f32 to vector<64x128xf32>
      %20 = arith.mulf %18, %19 : vector<64x128xf32>
      %cst_9 = arith.constant 9.99999995E+11 : f32
      %21 = vector.broadcast %cst_9 : f32 to vector<64x128xf32>
      %22 = arith.addf %20, %21 : vector<64x128xf32>
      %cst_10 = arith.constant 0.000000e+00 : f32
      %23 = vector.broadcast %cst_10 : f32 to vector<64x128xf32>
      %24 = arith.subf %23, %22 : vector<64x128xf32>
      %c0_11 = arith.constant 0 : index
      %c0_12 = arith.constant 0 : index
      %c0_13 = arith.constant 0 : index
      %c0_14 = arith.constant 0 : index
      %25 = vector.load %arg9[%c0_11, %c0_12, %c0_13, %c0_14] : memref<1x4x128x128xf32, #tpu.memory_space<vmem>>, vector<1x1x64x128xf32>
      %26 = vector.shape_cast %25 : vector<1x1x64x128xf32> to vector<64x128xf32>
      %27 = vector.shape_cast %24 : vector<64x128xf32> to vector<1x1x64x128xf32>
      tpu.vector_store %arg9[%c0_11, %c0_12, %c0_13, %c0_14], %27 {strides = array<i32>} : memref<1x4x128x128xf32, #tpu.memory_space<vmem>>, vector<1x1x64x128xf32>,
      %c0_15 = arith.constant 0 : index
      %c1 = arith.constant 1 : index
      %c0_16 = arith.constant 0 : index
      %c0_17 = arith.constant 0 : index
      %28 = vector.load %arg9[%c0_15, %c1, %c0_16, %c0_17] : memref<1x4x128x128xf32, #tpu.memory_space<vmem>>, vector<1x1x64x128xf32>
      %29 = vector.shape_cast %28 : vector<1x1x64x128xf32> to vector<64x128xf32>
      %30 = vector.shape_cast %24 : vector<64x128xf32> to vector<1x1x64x128xf32>
      tpu.vector_store %arg9[%c0_15, %c1, %c0_16, %c0_17], %30 {strides = array<i32>} : memref<1x4x128x128xf32, #tpu.memory_space<vmem>>, vector<1x1x64x128xf32>,
      %c0_18 = arith.constant 0 : index
      %c2 = arith.constant 2 : index
      %c0_19 = arith.constant 0 : index
      %c0_20 = arith.constant 0 : index
      %31 = vector.load %arg9[%c0_18, %c2, %c0_19, %c0_20] : memref<1x4x128x128xf32, #tpu.memory_space<vmem>>, vector<1x1x64x128xf32>
      %32 = vector.shape_cast %31 : vector<1x1x64x128xf32> to vector<64x128xf32>
      %33 = vector.shape_cast %24 : vector<64x128xf32> to vector<1x1x64x128xf32>
      tpu.vector_store %arg9[%c0_18, %c2, %c0_19, %c0_20], %33 {strides = array<i32>} : memref<1x4x128x128xf32, #tpu.memory_space<vmem>>, vector<1x1x64x128xf32>,
      %c0_21 = arith.constant 0 : index
      %c3 = arith.constant 3 : index
      %c0_22 = arith.constant 0 : index
      %c0_23 = arith.constant 0 : index
      %34 = vector.load %arg9[%c0_21, %c3, %c0_22, %c0_23] : memref<1x4x128x128xf32, #tpu.memory_space<vmem>>, vector<1x1x64x128xf32>
      %35 = vector.shape_cast %34 : vector<1x1x64x128xf32> to vector<64x128xf32>
      %36 = vector.shape_cast %24 : vector<64x128xf32> to vector<1x1x64x128xf32>
      tpu.vector_store %arg9[%c0_21, %c3, %c0_22, %c0_23], %36 {strides = array<i32>} : memref<1x4x128x128xf32, #tpu.memory_space<vmem>>, vector<1x1x64x128xf32>,
      %37 = vector.extract_strided_slice %12 {offsets = [64, 0], sizes = [64, 1], strides = [1, 1]} : vector<128x1xf32> to vector<64x1xf32>
      %38 = vector.broadcast %37 : vector<64x1xf32> to vector<64x128xf32>
      %39 = vector.broadcast %3 : vector<1x128xf32> to vector<64x128xf32>
      %40 = arith.mulf %38, %39 : vector<64x128xf32>
      %cst_24 = arith.constant 1.000000e+00 : f32
      %41 = vector.broadcast %cst_24 : f32 to vector<64x128xf32>
      %42 = arith.subf %41, %40 : vector<64x128xf32>
      %cst_25 = arith.constant 9.99999995E+11 : f32
      %43 = vector.broadcast %cst_25 : f32 to vector<64x128xf32>
      %44 = arith.mulf %42, %43 : vector<64x128xf32>
      %cst_26 = arith.constant 9.99999995E+11 : f32
      %45 = vector.broadcast %cst_26 : f32 to vector<64x128xf32>
      %46 = arith.addf %44, %45 : vector<64x128xf32>
      %cst_27 = arith.constant 0.000000e+00 : f32
      %47 = vector.broadcast %cst_27 : f32 to vector<64x128xf32>
      %48 = arith.subf %47, %46 : vector<64x128xf32>
      %c0_28 = arith.constant 0 : index
      %c0_29 = arith.constant 0 : index
      %c64 = arith.constant 64 : index
      %c0_30 = arith.constant 0 : index
      %49 = vector.load %arg9[%c0_28, %c0_29, %c64, %c0_30] : memref<1x4x128x128xf32, #tpu.memory_space<vmem>>, vector<1x1x64x128xf32>
      %50 = vector.shape_cast %49 : vector<1x1x64x128xf32> to vector<64x128xf32>
      %51 = vector.shape_cast %48 : vector<64x128xf32> to vector<1x1x64x128xf32>
      tpu.vector_store %arg9[%c0_28, %c0_29, %c64, %c0_30], %51 {strides = array<i32>} : memref<1x4x128x128xf32, #tpu.memory_space<vmem>>, vector<1x1x64x128xf32>,
      %c0_31 = arith.constant 0 : index
      %c1_32 = arith.constant 1 : index
      %c64_33 = arith.constant 64 : index
      %c0_34 = arith.constant 0 : index
      %52 = vector.load %arg9[%c0_31, %c1_32, %c64_33, %c0_34] : memref<1x4x128x128xf32, #tpu.memory_space<vmem>>, vector<1x1x64x128xf32>
      %53 = vector.shape_cast %52 : vector<1x1x64x128xf32> to vector<64x128xf32>
      %54 = vector.shape_cast %48 : vector<64x128xf32> to vector<1x1x64x128xf32>
      tpu.vector_store %arg9[%c0_31, %c1_32, %c64_33, %c0_34], %54 {strides = array<i32>} : memref<1x4x128x128xf32, #tpu.memory_space<vmem>>, vector<1x1x64x128xf32>,
      %c0_35 = arith.constant 0 : index
      %c2_36 = arith.constant 2 : index
      %c64_37 = arith.constant 64 : index
      %c0_38 = arith.constant 0 : index
      %55 = vector.load %arg9[%c0_35, %c2_36, %c64_37, %c0_38] : memref<1x4x128x128xf32, #tpu.memory_space<vmem>>, vector<1x1x64x128xf32>
      %56 = vector.shape_cast %55 : vector<1x1x64x128xf32> to vector<64x128xf32>
      %57 = vector.shape_cast %48 : vector<64x128xf32> to vector<1x1x64x128xf32>
      tpu.vector_store %arg9[%c0_35, %c2_36, %c64_37, %c0_38], %57 {strides = array<i32>} : memref<1x4x128x128xf32, #tpu.memory_space<vmem>>, vector<1x1x64x128xf32>,
      %c0_39 = arith.constant 0 : index
      %c3_40 = arith.constant 3 : index
      %c64_41 = arith.constant 64 : index
      %c0_42 = arith.constant 0 : index
      %58 = vector.load %arg9[%c0_39, %c3_40, %c64_41, %c0_42] : memref<1x4x128x128xf32, #tpu.memory_space<vmem>>, vector<1x1x64x128xf32>
      %59 = vector.shape_cast %58 : vector<1x1x64x128xf32> to vector<64x128xf32>
      %60 = vector.shape_cast %48 : vector<64x128xf32> to vector<1x1x64x128xf32>
      tpu.vector_store %arg9[%c0_39, %c3_40, %c64_41, %c0_42], %60 {strides = array<i32>} : memref<1x4x128x128xf32, #tpu.memory_space<vmem>>, vector<1x1x64x128xf32>,
    } else {
    }
    %true = arith.constant true
    %8 = arith.xori %5, %true : i1
    %9 = arith.extui %8 : i1 to i32
    %c0_i32_4 = arith.constant 0 : i32
    %10 = arith.cmpi ne, %9, %c0_i32_4 : i32
    scf.if %10 {
      %c0_5 = arith.constant 0 : index
      %c0_6 = arith.constant 0 : index
      %c0_7 = arith.constant 0 : index
      %11 = vector.load %arg3[%c0_5, %c0_6, %c0_7] : memref<1x128x16xf32, #tpu.memory_space<vmem>>, vector<1x128x16xf32>
      %12 = vector.shape_cast %11 : vector<1x128x16xf32> to vector<128x16xf32>
      %c0_8 = arith.constant 0 : index
      %c0_9 = arith.constant 0 : index
      %c0_10 = arith.constant 0 : index
      %13 = vector.load %arg4[%c0_8, %c0_9, %c0_10] : memref<1x128x16xf32, #tpu.memory_space<vmem>>, vector<1x128x16xf32>
      %14 = vector.shape_cast %13 : vector<1x128x16xf32> to vector<128x16xf32>
      %cst = arith.constant dense<0.000000e+00> : vector<128x128xf32>
      %15 = tpu.matmul %12, %14, %cst {dimension_numbers = #tpu.dot_dimension_numbers<[1], [1], [0], [0], [0, 0, 1, 0], [], []>} : vector<128x16xf32>, vector<128x16xf32>, vector<128x128xf32> -> vector<128x128xf32>
      %c0_11 = arith.constant 0 : index
      %c0_12 = arith.constant 0 : index
      %16 = vector.load %arg10[%c0_11, %c0_12] : memref<128x128xf32, #tpu.memory_space<vmem>>, vector<128x128xf32>
      tpu.vector_store %arg10[%c0_11, %c0_12], %15 {strides = array<i32>} : memref<128x128xf32, #tpu.memory_space<vmem>>, vector<128x128xf32>,
      %c0_13 = arith.constant 0 : index
      %c0_14 = arith.constant 0 : index
      %c0_15 = arith.constant 0 : index
      %17 = vector.load %arg7[%c0_13, %c0_14, %c0_15] : memref<1x128x1xf32, #tpu.memory_space<vmem>>, vector<1x128x1xf32>
      %18 = vector.shape_cast %17 : vector<1x128x1xf32> to vector<128x1xf32>
      %c0_16 = arith.constant 0 : index
      %c0_17 = arith.constant 0 : index
      %c0_18 = arith.constant 0 : index
      %19 = vector.load %arg5[%c0_16, %c0_17, %c0_18] : memref<1x128x4xf32, #tpu.memory_space<vmem>>, vector<1x128x4xf32>
      %20 = vector.shape_cast %19 : vector<1x128x4xf32> to vector<128x4xf32>
      %c0_19 = arith.constant 0 : index
      %c0_20 = arith.constant 0 : index
      %c0_21 = arith.constant 0 : index
      %21 = vector.load %arg6[%c0_19, %c0_20, %c0_21] : memref<1x4x128xf32, #tpu.memory_space<vmem>>, vector<1x4x128xf32>
      %22 = vector.shape_cast %21 : vector<1x4x128xf32> to vector<4x128xf32>
      %23 = tpu.iota {dimensions = array<i32: 1>} : vector<1x128xi32>
      %24 = vector.broadcast %1 : i32 to vector<1x128xi32>
      %25 = arith.addi %23, %24 : vector<1x128xi32>
      %26 = vector.extract_strided_slice %18 {offsets = [0, 0], sizes = [64, 1], strides = [1, 1]} : vector<128x1xf32> to vector<64x1xf32>
      %27 = vector.broadcast %26 : vector<64x1xf32> to vector<64x128xf32>
      %28 = vector.broadcast %3 : vector<1x128xf32> to vector<64x128xf32>
      %29 = arith.mulf %27, %28 : vector<64x128xf32>
      %cst_22 = arith.constant 1.000000e+00 : f32
      %30 = vector.broadcast %cst_22 : f32 to vector<64x128xf32>
      %31 = arith.subf %30, %29 : vector<64x128xf32>
      %cst_23 = arith.constant 9.99999995E+11 : f32
      %32 = vector.broadcast %cst_23 : f32 to vector<64x128xf32>
      %33 = arith.mulf %31, %32 : vector<64x128xf32>
      %34 = tpu.iota {dimensions = array<i32: 0>} : vector<64x1xi32>
      %c0_i32_24 = arith.constant 0 : i32
      %35 = arith.addi %0, %c0_i32_24 : i32
      %36 = vector.broadcast %35 : i32 to vector<64x1xi32>
      %37 = arith.addi %34, %36 : vector<64x1xi32>
      %38 = vector.broadcast %37 : vector<64x1xi32> to vector<64x128xi32>
      %39 = vector.broadcast %25 : vector<1x128xi32> to vector<64x128xi32>
      %40 = arith.cmpi sgt, %38, %39 : vector<64x128xi32>
      %41 = arith.extui %40 : vector<64x128xi1> to vector<64x128xi32>
      %42 = arith.sitofp %41 : vector<64x128xi32> to vector<64x128xf32>
      %cst_25 = arith.constant 9.99999995E+11 : f32
      %43 = vector.broadcast %cst_25 : f32 to vector<64x128xf32>
      %44 = arith.mulf %42, %43 : vector<64x128xf32>
      %45 = arith.addf %33, %44 : vector<64x128xf32>
      %c0_26 = arith.constant 0 : index
      %c0_27 = arith.constant 0 : index
      %46 = vector.load %arg10[%c0_26, %c0_27] : memref<128x128xf32, #tpu.memory_space<vmem>>, vector<64x128xf32>
      %47 = arith.subf %46, %45 : vector<64x128xf32>
      %48 = vector.extract_strided_slice %20 {offsets = [0, 0], sizes = [64, 1], strides = [1, 1]} : vector<128x4xf32> to vector<64x1xf32>
      %49 = vector.broadcast %48 : vector<64x1xf32> to vector<64x128xf32>
      %50 = arith.addf %47, %49 : vector<64x128xf32>
      %51 = vector.extract_strided_slice %22 {offsets = [0, 0], sizes = [1, 128], strides = [1, 1]} : vector<4x128xf32> to vector<1x128xf32>
      %52 = vector.broadcast %51 : vector<1x128xf32> to vector<64x128xf32>
      %53 = arith.addf %50, %52 : vector<64x128xf32>
      %c0_28 = arith.constant 0 : index
      %c0_29 = arith.constant 0 : index
      %c0_30 = arith.constant 0 : index
      %c0_31 = arith.constant 0 : index
      %54 = vector.load %arg9[%c0_28, %c0_29, %c0_30, %c0_31] : memref<1x4x128x128xf32, #tpu.memory_space<vmem>>, vector<1x1x64x128xf32>
      %55 = vector.shape_cast %54 : vector<1x1x64x128xf32> to vector<64x128xf32>
      %56 = vector.shape_cast %53 : vector<64x128xf32> to vector<1x1x64x128xf32>
      tpu.vector_store %arg9[%c0_28, %c0_29, %c0_30, %c0_31], %56 {strides = array<i32>} : memref<1x4x128x128xf32, #tpu.memory_space<vmem>>, vector<1x1x64x128xf32>,
      %57 = vector.extract_strided_slice %20 {offsets = [0, 1], sizes = [64, 1], strides = [1, 1]} : vector<128x4xf32> to vector<64x1xf32>
      %58 = vector.broadcast %57 : vector<64x1xf32> to vector<64x128xf32>
      %59 = arith.addf %47, %58 : vector<64x128xf32>
      %60 = vector.extract_strided_slice %22 {offsets = [1, 0], sizes = [1, 128], strides = [1, 1]} : vector<4x128xf32> to vector<1x128xf32>
      %61 = vector.broadcast %60 : vector<1x128xf32> to vector<64x128xf32>
      %62 = arith.addf %59, %61 : vector<64x128xf32>
      %c0_32 = arith.constant 0 : index
      %c1 = arith.constant 1 : index
      %c0_33 = arith.constant 0 : index
      %c0_34 = arith.constant 0 : index
      %63 = vector.load %arg9[%c0_32, %c1, %c0_33, %c0_34] : memref<1x4x128x128xf32, #tpu.memory_space<vmem>>, vector<1x1x64x128xf32>
      %64 = vector.shape_cast %63 : vector<1x1x64x128xf32> to vector<64x128xf32>
      %65 = vector.shape_cast %62 : vector<64x128xf32> to vector<1x1x64x128xf32>
      tpu.vector_store %arg9[%c0_32, %c1, %c0_33, %c0_34], %65 {strides = array<i32>} : memref<1x4x128x128xf32, #tpu.memory_space<vmem>>, vector<1x1x64x128xf32>,
      %66 = vector.extract_strided_slice %20 {offsets = [0, 2], sizes = [64, 1], strides = [1, 1]} : vector<128x4xf32> to vector<64x1xf32>
      %67 = vector.broadcast %66 : vector<64x1xf32> to vector<64x128xf32>
      %68 = arith.addf %47, %67 : vector<64x128xf32>
      %69 = vector.extract_strided_slice %22 {offsets = [2, 0], sizes = [1, 128], strides = [1, 1]} : vector<4x128xf32> to vector<1x128xf32>
      %70 = vector.broadcast %69 : vector<1x128xf32> to vector<64x128xf32>
      %71 = arith.addf %68, %70 : vector<64x128xf32>
      %c0_35 = arith.constant 0 : index
      %c2 = arith.constant 2 : index
      %c0_36 = arith.constant 0 : index
      %c0_37 = arith.constant 0 : index
      %72 = vector.load %arg9[%c0_35, %c2, %c0_36, %c0_37] : memref<1x4x128x128xf32, #tpu.memory_space<vmem>>, vector<1x1x64x128xf32>
      %73 = vector.shape_cast %72 : vector<1x1x64x128xf32> to vector<64x128xf32>
      %74 = vector.shape_cast %71 : vector<64x128xf32> to vector<1x1x64x128xf32>
      tpu.vector_store %arg9[%c0_35, %c2, %c0_36, %c0_37], %74 {strides = array<i32>} : memref<1x4x128x128xf32, #tpu.memory_space<vmem>>, vector<1x1x64x128xf32>,
      %75 = vector.extract_strided_slice %20 {offsets = [0, 3], sizes = [64, 1], strides = [1, 1]} : vector<128x4xf32> to vector<64x1xf32>
      %76 = vector.broadcast %75 : vector<64x1xf32> to vector<64x128xf32>
      %77 = arith.addf %47, %76 : vector<64x128xf32>
      %78 = vector.extract_strided_slice %22 {offsets = [3, 0], sizes = [1, 128], strides = [1, 1]} : vector<4x128xf32> to vector<1x128xf32>
      %79 = vector.broadcast %78 : vector<1x128xf32> to vector<64x128xf32>
      %80 = arith.addf %77, %79 : vector<64x128xf32>
      %c0_38 = arith.constant 0 : index
      %c3 = arith.constant 3 : index
      %c0_39 = arith.constant 0 : index
      %c0_40 = arith.constant 0 : index
      %81 = vector.load %arg9[%c0_38, %c3, %c0_39, %c0_40] : memref<1x4x128x128xf32, #tpu.memory_space<vmem>>, vector<1x1x64x128xf32>
      %82 = vector.shape_cast %81 : vector<1x1x64x128xf32> to vector<64x128xf32>
      %83 = vector.shape_cast %80 : vector<64x128xf32> to vector<1x1x64x128xf32>
      tpu.vector_store %arg9[%c0_38, %c3, %c0_39, %c0_40], %83 {strides = array<i32>} : memref<1x4x128x128xf32, #tpu.memory_space<vmem>>, vector<1x1x64x128xf32>,
      %84 = vector.extract_strided_slice %18 {offsets = [64, 0], sizes = [64, 1], strides = [1, 1]} : vector<128x1xf32> to vector<64x1xf32>
      %85 = vector.broadcast %84 : vector<64x1xf32> to vector<64x128xf32>
      %86 = vector.broadcast %3 : vector<1x128xf32> to vector<64x128xf32>
      %87 = arith.mulf %85, %86 : vector<64x128xf32>
      %cst_41 = arith.constant 1.000000e+00 : f32
      %88 = vector.broadcast %cst_41 : f32 to vector<64x128xf32>
      %89 = arith.subf %88, %87 : vector<64x128xf32>
      %cst_42 = arith.constant 9.99999995E+11 : f32
      %90 = vector.broadcast %cst_42 : f32 to vector<64x128xf32>
      %91 = arith.mulf %89, %90 : vector<64x128xf32>
      %92 = tpu.iota {dimensions = array<i32: 0>} : vector<64x1xi32>
      %c64_i32 = arith.constant 64 : i32
      %93 = arith.addi %0, %c64_i32 : i32
      %94 = vector.broadcast %93 : i32 to vector<64x1xi32>
      %95 = arith.addi %92, %94 : vector<64x1xi32>
      %96 = vector.broadcast %95 : vector<64x1xi32> to vector<64x128xi32>
      %97 = vector.broadcast %25 : vector<1x128xi32> to vector<64x128xi32>
      %98 = arith.cmpi sgt, %96, %97 : vector<64x128xi32>
      %99 = arith.extui %98 : vector<64x128xi1> to vector<64x128xi32>
      %100 = arith.sitofp %99 : vector<64x128xi32> to vector<64x128xf32>
      %cst_43 = arith.constant 9.99999995E+11 : f32
      %101 = vector.broadcast %cst_43 : f32 to vector<64x128xf32>
      %102 = arith.mulf %100, %101 : vector<64x128xf32>
      %103 = arith.addf %91, %102 : vector<64x128xf32>
      %c64 = arith.constant 64 : index
      %c0_44 = arith.constant 0 : index
      %104 = vector.load %arg10[%c64, %c0_44] : memref<128x128xf32, #tpu.memory_space<vmem>>, vector<64x128xf32>
      %105 = arith.subf %104, %103 : vector<64x128xf32>
      %106 = vector.extract_strided_slice %20 {offsets = [64, 0], sizes = [64, 1], strides = [1, 1]} : vector<128x4xf32> to vector<64x1xf32>
      %107 = vector.broadcast %106 : vector<64x1xf32> to vector<64x128xf32>
      %108 = arith.addf %105, %107 : vector<64x128xf32>
      %109 = vector.extract_strided_slice %22 {offsets = [0, 0], sizes = [1, 128], strides = [1, 1]} : vector<4x128xf32> to vector<1x128xf32>
      %110 = vector.broadcast %109 : vector<1x128xf32> to vector<64x128xf32>
      %111 = arith.addf %108, %110 : vector<64x128xf32>
      %c0_45 = arith.constant 0 : index
      %c0_46 = arith.constant 0 : index
      %c64_47 = arith.constant 64 : index
      %c0_48 = arith.constant 0 : index
      %112 = vector.load %arg9[%c0_45, %c0_46, %c64_47, %c0_48] : memref<1x4x128x128xf32, #tpu.memory_space<vmem>>, vector<1x1x64x128xf32>
      %113 = vector.shape_cast %112 : vector<1x1x64x128xf32> to vector<64x128xf32>
      %114 = vector.shape_cast %111 : vector<64x128xf32> to vector<1x1x64x128xf32>
      tpu.vector_store %arg9[%c0_45, %c0_46, %c64_47, %c0_48], %114 {strides = array<i32>} : memref<1x4x128x128xf32, #tpu.memory_space<vmem>>, vector<1x1x64x128xf32>,
      %115 = vector.extract_strided_slice %20 {offsets = [64, 1], sizes = [64, 1], strides = [1, 1]} : vector<128x4xf32> to vector<64x1xf32>
      %116 = vector.broadcast %115 : vector<64x1xf32> to vector<64x128xf32>
      %117 = arith.addf %105, %116 : vector<64x128xf32>
      %118 = vector.extract_strided_slice %22 {offsets = [1, 0], sizes = [1, 128], strides = [1, 1]} : vector<4x128xf32> to vector<1x128xf32>
      %119 = vector.broadcast %118 : vector<1x128xf32> to vector<64x128xf32>
      %120 = arith.addf %117, %119 : vector<64x128xf32>
      %c0_49 = arith.constant 0 : index
      %c1_50 = arith.constant 1 : index
      %c64_51 = arith.constant 64 : index
      %c0_52 = arith.constant 0 : index
      %121 = vector.load %arg9[%c0_49, %c1_50, %c64_51, %c0_52] : memref<1x4x128x128xf32, #tpu.memory_space<vmem>>, vector<1x1x64x128xf32>
      %122 = vector.shape_cast %121 : vector<1x1x64x128xf32> to vector<64x128xf32>
      %123 = vector.shape_cast %120 : vector<64x128xf32> to vector<1x1x64x128xf32>
      tpu.vector_store %arg9[%c0_49, %c1_50, %c64_51, %c0_52], %123 {strides = array<i32>} : memref<1x4x128x128xf32, #tpu.memory_space<vmem>>, vector<1x1x64x128xf32>,
      %124 = vector.extract_strided_slice %20 {offsets = [64, 2], sizes = [64, 1], strides = [1, 1]} : vector<128x4xf32> to vector<64x1xf32>
      %125 = vector.broadcast %124 : vector<64x1xf32> to vector<64x128xf32>
      %126 = arith.addf %105, %125 : vector<64x128xf32>
      %127 = vector.extract_strided_slice %22 {offsets = [2, 0], sizes = [1, 128], strides = [1, 1]} : vector<4x128xf32> to vector<1x128xf32>
      %128 = vector.broadcast %127 : vector<1x128xf32> to vector<64x128xf32>
      %129 = arith.addf %126, %128 : vector<64x128xf32>
      %c0_53 = arith.constant 0 : index
      %c2_54 = arith.constant 2 : index
      %c64_55 = arith.constant 64 : index
      %c0_56 = arith.constant 0 : index
      %130 = vector.load %arg9[%c0_53, %c2_54, %c64_55, %c0_56] : memref<1x4x128x128xf32, #tpu.memory_space<vmem>>, vector<1x1x64x128xf32>
      %131 = vector.shape_cast %130 : vector<1x1x64x128xf32> to vector<64x128xf32>
      %132 = vector.shape_cast %129 : vector<64x128xf32> to vector<1x1x64x128xf32>
      tpu.vector_store %arg9[%c0_53, %c2_54, %c64_55, %c0_56], %132 {strides = array<i32>} : memref<1x4x128x128xf32, #tpu.memory_space<vmem>>, vector<1x1x64x128xf32>,
      %133 = vector.extract_strided_slice %20 {offsets = [64, 3], sizes = [64, 1], strides = [1, 1]} : vector<128x4xf32> to vector<64x1xf32>
      %134 = vector.broadcast %133 : vector<64x1xf32> to vector<64x128xf32>
      %135 = arith.addf %105, %134 : vector<64x128xf32>
      %136 = vector.extract_strided_slice %22 {offsets = [3, 0], sizes = [1, 128], strides = [1, 1]} : vector<4x128xf32> to vector<1x128xf32>
      %137 = vector.broadcast %136 : vector<1x128xf32> to vector<64x128xf32>
      %138 = arith.addf %135, %137 : vector<64x128xf32>
      %c0_57 = arith.constant 0 : index
      %c3_58 = arith.constant 3 : index
      %c64_59 = arith.constant 64 : index
      %c0_60 = arith.constant 0 : index
      %139 = vector.load %arg9[%c0_57, %c3_58, %c64_59, %c0_60] : memref<1x4x128x128xf32, #tpu.memory_space<vmem>>, vector<1x1x64x128xf32>
      %140 = vector.shape_cast %139 : vector<1x1x64x128xf32> to vector<64x128xf32>
      %141 = vector.shape_cast %138 : vector<64x128xf32> to vector<1x1x64x128xf32>
      tpu.vector_store %arg9[%c0_57, %c3_58, %c64_59, %c0_60], %141 {strides = array<i32>} : memref<1x4x128x128xf32, #tpu.memory_space<vmem>>, vector<1x1x64x128xf32>,
    } else {
    }
    return
  }
  func.func @transform_0(%arg0: i32, %arg1: i32, %arg2: i32) -> (i32, i32, i32) {
    %c0_i32 = arith.constant 0 : i32
    %c0_i32_0 = arith.constant 0 : i32
    return %arg0, %arg1, %c0_i32 : i32, i32, i32
  }
  func.func @transform_1(%arg0: i32, %arg1: i32, %arg2: i32) -> (i32, i32, i32) {
    %c0_i32 = arith.constant 0 : i32
    %c0_i32_0 = arith.constant 0 : i32
    return %arg0, %arg2, %c0_i32 : i32, i32, i32
  }
  func.func @transform_2(%arg0: i32, %arg1: i32, %arg2: i32) -> (i32, i32, i32) {
    %c0_i32 = arith.constant 0 : i32
    %c0_i32_0 = arith.constant 0 : i32
    return %arg0, %arg1, %c0_i32 : i32, i32, i32
  }
  func.func @transform_3(%arg0: i32, %arg1: i32, %arg2: i32) -> (i32, i32, i32) {
    %c0_i32 = arith.constant 0 : i32
    %c0_i32_0 = arith.constant 0 : i32
    return %arg0, %c0_i32, %arg2 : i32, i32, i32
  }
  func.func @transform_4(%arg0: i32, %arg1: i32, %arg2: i32) -> (i32, i32, i32) {
    %c0_i32 = arith.constant 0 : i32
    %c0_i32_0 = arith.constant 0 : i32
    return %arg0, %arg1, %c0_i32 : i32, i32, i32
  }
  func.func @transform_5(%arg0: i32, %arg1: i32, %arg2: i32) -> (i32, i32, i32) {
    %c0_i32 = arith.constant 0 : i32
    %c0_i32_0 = arith.constant 0 : i32
    return %arg0, %c0_i32, %arg2 : i32, i32, i32
  }
  func.func @transform_6(%arg0: i32, %arg1: i32, %arg2: i32) -> (i32, i32, i32, i32) {
    %c0_i32 = arith.constant 0 : i32
    %c0_i32_0 = arith.constant 0 : i32
    return %arg0, %c0_i32, %arg1, %arg2 : i32, i32, i32, i32
  }
}

</mosaic_0001>

<bundles_post_ra>
// kernel: tpu_custom_call.1
= control target key start
LH: loop header
LB: loop body
LE: loop exit
PB: predicated region body
PF: predicated region fallthrough
CT: control target
= control target key end

     0   :  { %11 = vsyncpa [#allocation4], 0  ;;  %s3427_s0 = inlined_call_operand.vmem [shape: f32[2,128,16], index: 0, kind: input, shape index: {}]   ;;  %s3428_s1 = inlined_call_operand.vmem [shape: f32[2,128,16], index: 1, kind: input, shape index: {}]   ;;  %s3429_s2 = inlined_call_operand.vmem [shape: f32[2,128,4], index: 2, kind: input, shape index: {}]   ;;  %s3430_s3 = inlined_call_operand.vmem [shape: f32[2,4,128], index: 3, kind: input, shape index: {}]   ;;  %s3431_s4 = inlined_call_operand.vmem [shape: f32[2,128,1], index: 4, kind: input, shape index: {}]   ;;  %s3432_s5 = inlined_call_operand.vmem [shape: f32[2,1,128], index: 5, kind: input, shape index: {}]   ;;  %s3433_s6 = inlined_call_operand.hbm [shape: f32[2,4,128,128], index: 6, kind: output, shape index: {}]  }
   0x1   :  { %13 = vsyncpa [#allocation4 + $0x1], 0  ;;  %s2496_s21 = smov 0   ;;  %s2498_s22 = smov 0  }
   0x2   :  { %s2500_s23 = smov 0   ;;  %s2502_s24 = smov 0  }
   0x3   :  { %s2504_s25 = smov 0   ;;  %s2506_s26 = smov 0  }
   0x4 LB: > { %s1977_s27 = sadd.s32 4294967295, %s2451_s26   ;;  %s1978_s28 = sadd.s32 4294967294, %s2451_s26   ;;  %s2451_s26 = sphi %s2506_s26, %s19_s26   ;;  %s2447_s25 = sphi %s2504_s25, %s3521_s25   ;;  %s2443_s24 = sphi %s2502_s24, %s3520_s24   ;;  %s2439_s23 = sphi %s2500_s23, %s3519_s23   ;;  %s2435_s22 = sphi %s2498_s22, %s3518_s22   ;;  %s2431_s21 = sphi %s2496_s21, %s3517_s21  }
   0x5   : > { %s38_s29 = sadd.s32 1, %s2447_s25  ;;  %s217_s30 = sadd.s32 1, %s2439_s23 }
   0x6   : > { %p40_p0 = scmp.ge.s32.totalorder %s38_s29, 2  ;;  %p227_p1 = scmp.ne.s32.totalorder %s2439_s23, %s2435_s22 }
   0x7   : > { %p228_p2 = scmp.eq.s32.totalorder %s1977_s27, 1  ;;  %p233_p3 = scmp.ne.s32.totalorder %s2435_s22, %s2431_s21 }
   0x8   : > { %s3523_s29 = smov (%p40_p0, %s38_s29), 0  ;;  %p234_p5 = scmp.eq.s32.totalorder %s1978_s28, 1 }
   0x9   : > { %p2536_p4 = por %p228_p2, %p227_p1  ;;  %s210_s8 = ssub.s32 %s2447_s25, %s3523_s29 }
   0xa   : > { %p1981_p6 = scmp.ge.s32.totalorder %s2451_s26, 1  ;;  %p215_p7 = scmp.eq.s32.totalorder %s210_s8, 0 }
   0xb   : > { %p2543_p8 = por %p234_p5, %p233_p3  ;;  %p323_p9 = scmp.lt.s32.totalorder %s2451_s26, 3 }
   0xc   : > { %s2549_s10 = scalar_select %p215_p7, %s2439_s23, %s217_s30  }
   0xd   : > { %p324_p10 = pnand %p1981_p6, %p323_p9 }
   0xf   : > { %327 = sbr.rel (%p324_p10) target bundleno = 368 (0x170), region = 44 }
  0x16   : > { %p398_p11 = scmp.lt.s32.totalorder %s2443_s24, 1  ;;  %v2453_v0 = vmov 0   ;;  %vm744_vm0 = vcmask 130048   ;;  %v2454_v38 = vmov 1   ;;  %v2455_v50 = vmov 2  }
  0x17   : > { %2362 = vset.pattern.permute.xlu1 %v2453_v0  ;;  %2361 = vset.pattern.permute.xlu0 %v2453_v0  ;;  %vm2578_vm1 = vmpackc.low %vm744_vm0, %vm744_vm0  ;;  %v2456_v61 = vmov 3  }
  0x18   : > { %s2555_s11 = scalar_select %p398_p11, %s2443_s24, 1 }
  0x1a   : > { %s2558_s12 = sshll.u32 %s2555_s11, 7  ;;  %s449_s14 = scalar_lea.vmem %s3432_s5, %s2555_s11 }
  0x1b   : > { %s2564_s15 = scalar_lea.vmem %s3431_s4, %s2558_s12  ;;  %s2572_s18 = scalar_lea.vmem %s3428_s1, %s2558_s12 }
  0x1c   : > { %v1004_v1 = vld [vmem:[%s2564_s15 + $0x10] sm:$0xff]  ;;  %v1002_v2 = vld [vmem:[%s2564_s15] sm:$0xff]  ;;  %v729_v4 = vld [vmem:[%s2572_s18 + $0x8] sm:$0xff]  ;;  %s2606_s27 = scalar_lea.vmem %s3427_s0, %s2558_s12  ;;  %s2614_s8 = scalar_lea.vmem %s3429_s2, %s2558_s12 }
  0x1d   : > { %1051 = vperm.xlu1 %2362, %v1004_v1   ;;  %v728_v3 = vld [vmem:[%s2572_s18] sm:$0xff]  ;;  %1041 = vperm.xlu0 %2361, %v1002_v2   ;;  %v1005_v7 = vld [vmem:[%s2564_s15 + $0x18] sm:$0xff]  ;;  %v1003_v8 = vld [vmem:[%s2564_s15 + $0x8] sm:$0xff] }
  0x1e   : > { %v2235_v6 = vpack.c.bf16 %v729_v4, %v728_v3  ;;  %v730_v9 = vld [vmem:[%s2572_s18 + $0x10] sm:$0xff]  ;;  %v731_v10 = vld [vmem:[%s2572_s18 + $0x18] sm:$0xff]  ;;  %v1007_v12 = vld [vmem:[%s2564_s15 + $0x28] sm:$0xff] }
  0x1f   : > { %v2241_v11 = vpack.c.bf16 %v731_v10, %v730_v9  ;;  %v1006_v13 = vld [vmem:[%s2564_s15 + $0x20] sm:$0xff]  ;;  %v733_v15 = vld [vmem:[%s2572_s18 + $0x28] sm:$0xff]  ;;  %v1009_v16 = vld [vmem:[%s2564_s15 + $0x38] sm:$0xff] }
  0x20   : > { %2237 = vmatprep.subr.msk.bf16.mxu0 %vm2578_vm1, %v2235_v6  ;;  %2283 = vmatprep.subr.msk.bf16.mxu1 %vm2578_vm1, %v2235_v6  ;;  %v732_v14 = vld [vmem:[%s2572_s18 + $0x20] sm:$0xff]  ;;  %v1008_v17 = vld [vmem:[%s2564_s15 + $0x30] sm:$0xff]  ;;  %v2623_v21 = vld [vmem:[%s2614_s8 + $0x8] sm:$0xff] }
  0x21   : > { %2240 = vmatpush3.bf16.xpose.msk.msra.mxu0 %vm2578_vm1, %v2235_v6  ;;  %2291 = vmatpush3.bf16.xpose.msk.msra.mxu1 %vm2578_vm1, %v2235_v6  ;;  %v2247_v18 = vpack.c.bf16 %v733_v15, %v732_v14  ;;  %v712_v19 = vld [vmem:[%s2606_s27] sm:$0xff]  ;;  %v734_v23 = vld [vmem:[%s2572_s18 + $0x30] sm:$0xff]  ;;  %v735_v24 = vld [vmem:[%s2572_s18 + $0x38] sm:$0xff] }
  0x22   : > { %1056 = vperm.xlu1 %2362, %v1005_v7   ;;  %1046 = vperm.xlu0 %2361, %v1003_v8   ;;  %v720_v20 = vld [vmem:[%s2606_s27 + $0x40] sm:$0xff]  ;;  %v2639_v25 = vld [vmem:[%s2614_s8 + $0x18] sm:$0xff]  ;;  %v2642_v26 = vld [vmem:[%s2614_s8 + $0x10] sm:$0xff]  ;;  %v2253_v27 = vpack.c.bf16 %v735_v24, %v734_v23 }
  0x23   : > { %2243 = vmatprep.subr.msk.bf16.mxu0 %vm2578_vm1, %v2241_v11  ;;  %2284 = vmatprep.subr.msk.bf16.mxu1 %vm2578_vm1, %v2241_v11  ;;  %v2626_v22 = vld [vmem:[%s2614_s8] sm:$0xff]  ;;  %v2651_v28 = vld [vmem:[%s2614_s8 + $0x28] sm:$0xff]  ;;  %v2665_v32 = vld [vmem:[%s2614_s8 + $0x38] sm:$0xff] }
  0x24   : > { %2211 = vmatprep.mubr.msk.f32.mxu0 %vm744_vm0, %v712_v19  ;;  %2223 = vmatprep.mubr.msk.f32.mxu1 %vm744_vm0, %v720_v20  ;;  %v2654_v29 = vld [vmem:[%s2614_s8 + $0x20] sm:$0xff]  ;;  %v737_v31 = vld [vmem:[%s2572_s18 + $0x48] sm:$0xff]  ;;  %v2668_v33 = vld [vmem:[%s2614_s8 + $0x30] sm:$0xff] }
  0x25   : > { %v736_v30 = vld [vmem:[%s2572_s18 + $0x40] sm:$0xff]  ;;  %v1011_v35 = vld [vmem:[%s2564_s15 + $0x48] sm:$0xff]  ;;  %v738_v36 = vld [vmem:[%s2572_s18 + $0x50] sm:$0xff] }
  0x26   : > { %1066 = vperm.xlu1 %2362, %v1007_v12   ;;  %1061 = vperm.xlu0 %2361, %v1006_v13   ;;  %v2259_v34 = vpack.c.bf16 %v737_v31, %v736_v30  ;;  %v739_v37 = vld [vmem:[%s2572_s18 + $0x58] sm:$0xff]  ;;  %v1014_v40 = vld [vmem:[%s2564_s15 + $0x60] sm:$0xff]  ;;  %v1016_v41 = vld [vmem:[%s2564_s15 + $0x70] sm:$0xff] }
  0x27   : > { %v2265_v39 = vpack.c.bf16 %v739_v37, %v738_v36  ;;  %v740_v42 = vld [vmem:[%s2572_s18 + $0x60] sm:$0xff]  ;;  %v741_v43 = vld [vmem:[%s2572_s18 + $0x68] sm:$0xff]  ;;  %v2711_v46 = vld [vmem:[%s2614_s8 + $0x50] sm:$0xff] }
  0x28   : > { %v2271_v44 = vpack.c.bf16 %v741_v43, %v740_v42  ;;  %v2700_v45 = vld [vmem:[%s2614_s8 + $0x40] sm:$0xff]  ;;  %v742_v47 = vld [vmem:[%s2572_s18 + $0x70] sm:$0xff]  ;;  %v743_v48 = vld [vmem:[%s2572_s18 + $0x78] sm:$0xff]  ;;  %s394_s18 = sand.u32 1, %s2435_s22  }
  0x29   : > { %2246 = vmatpush3.bf16.xpose.msk.msra.mxu0 %vm2578_vm1, %v2241_v11  ;;  %2292 = vmatpush3.bf16.xpose.msk.msra.mxu1 %vm2578_vm1, %v2241_v11  ;;  %v2277_v49 = vpack.c.bf16 %v743_v48, %v742_v47  ;;  %v2720_v51 = vld [vmem:[%s2614_s8 + $0x60] sm:$0xff]  ;;  %v2731_v52 = vld [vmem:[%s2614_s8 + $0x70] sm:$0xff]  ;;  %v713_v53 = vld [vmem:[%s2606_s27 + $0x8] sm:$0xff]  ;;  %s3123_s19 = sshll.u32 %s394_s18, 9  ;;  %s3381_s12 = scalar_lea.sflag [#allocation4], %s394_s18 }
  0x2a   : > { %1076 = vperm.xlu1 %2362, %v1009_v16   ;;  %1071 = vperm.xlu0 %2361, %v1008_v17   ;;  %v721_v54 = vld [vmem:[%s2606_s27 + $0x48] sm:$0xff]  ;;  %v714_v55 = vld [vmem:[%s2606_s27 + $0x10] sm:$0xff]  ;;  %v715_v57 = vld [vmem:[%s2606_s27 + $0x18] sm:$0xff]  ;;  %s3158_s20 = scalar_lea.vmem [#allocation3], %s3123_s19 }
  0x2b   : > { %2249 = vmatprep.subr.msk.bf16.mxu0 %vm2578_vm1, %v2247_v18  ;;  %2285 = vmatprep.subr.msk.bf16.mxu1 %vm2578_vm1, %v2247_v18  ;;  %v722_v56 = vld [vmem:[%s2606_s27 + $0x50] sm:$0xff]  ;;  %v723_v58 = vld [vmem:[%s2606_s27 + $0x58] sm:$0xff]  ;;  %v716_v59 = vld [vmem:[%s2606_s27 + $0x20] sm:$0xff]  ;;  %s1813_s28 = sshll.u32 %s3158_s20, 4  ;;  %s3368_s28 = int_to_ptr.vmem [resolvable:$true] %s1813_s28 }
  0x2c   : > { %v724_v60 = vld [vmem:[%s2606_s27 + $0x60] sm:$0xff]  ;;  %v717_v62 = vld [vmem:[%s2606_s27 + $0x28] sm:$0xff]  ;;  %v718_v1 = vld [vmem:[%s2606_s27 + $0x30] sm:$0xff]  ;;  %s2373_s13 = scalar_lea.vmem %s3368_s28, 8192 }
  0x2d   : > { %v725_v63 = vld [vmem:[%s2606_s27 + $0x68] sm:$0xff]  ;;  %v726_v2 = vld [vmem:[%s2606_s27 + $0x70] sm:$0xff]  ;;  %v719_v3 = vld [vmem:[%s2606_s27 + $0x38] sm:$0xff]  ;;  %p2374_p12 = scmp.ne.s32.totalorder %s3368_s28, %s2373_s13 }
  0x2e   : > { %1190 = vperm.xlu1 %2362, %v2623_v21   ;;  %1185 = vperm.xlu0 %2361, %v2626_v22   ;;  %v727_v4 = vld [vmem:[%s2606_s27 + $0x78] sm:$0xff]  ;;  %v2787_v6 = vld [vmem:[%s2614_s8 + $0x68] sm:$0xff]  ;;  %v1010_v7 = vld [vmem:[%s2564_s15 + $0x40] sm:$0xff]  ;;  %s2145_s27 = sshll.u32 %s2443_s24, 13 }
  0x2f   : > { %v2781_v5 = vld [vmem:[%s2614_s8 + $0x58] sm:$0xff]  ;;  %v1012_v9 = vld [vmem:[%s2564_s15 + $0x50] sm:$0xff]  ;;  %v1015_v11 = vld [vmem:[%s2564_s15 + $0x68] sm:$0xff]  ;;  %p2375_p13 = pnand %p2374_p12, %p2536_p4 }
  0x30   : > { %v2793_v8 = vld [vmem:[%s2614_s8 + $0x78] sm:$0xff]  ;;  %v2819_v13 = vld [vmem:[%s449_s14] ss:$0 sm:$0xff]  ;;  %s2458_s14 = smov [#allocation3]  }
  0x31   : > { %2252 = vmatpush3.bf16.xpose.msk.msra.mxu0 %vm2578_vm1, %v2247_v18  ;;  %2293 = vmatpush3.bf16.xpose.msk.msra.mxu1 %vm2578_vm1, %v2247_v18  ;;  %v1013_v10 = vld [vmem:[%s2564_s15 + $0x58] sm:$0xff]  ;;  %p2376_p0 = pneg %p2375_p13 }
  0x32   : > { %1200 = vperm.xlu1 %2362, %v2639_v25   ;;  %1195 = vperm.xlu0 %2361, %v2642_v26   ;;  %v1017_v12 = vld [vmem:[%s2564_s15 + $0x78] sm:$0xff]  ;;  %s1989_s15 = sshll.u32 %s2555_s11, 2 }
  0x33   : > { %2255 = vmatprep.subr.msk.bf16.mxu0 %vm2578_vm1, %v2253_v27  ;;  %2286 = vmatprep.subr.msk.bf16.mxu1 %vm2578_vm1, %v2253_v27  ;;  %s433_s17 = scalar_lea.vmem %s3430_s3, %s1989_s15  ;;  %s2377_s15 = sshll.u32 %s2458_s14, 4  ;;  %s2378_s15 = int_to_ptr.vmem [resolvable:$false] %s2377_s15 }
  0x34   : > { %s2379_s16 = scalar_lea.vmem %s2378_s15, 16384  ;;  %p2380_p1 = scmp.lt.s32.totalorder %s3368_s28, %s2378_s15 }
  0x35   : > { %p2381_p2 = scmp.lt.s32.totalorder %s2379_s16, %s2373_s13 }
  0x36   : > { %1210 = vperm.xlu1 %2362, %v2651_v28   ;;  %1205 = vperm.xlu0 %2361, %v2654_v29  }
  0x37   : > { %p2382_p3 = por %p2381_p2, %p2380_p1 }
  0x39   : > { %2258 = vmatpush3.bf16.xpose.msk.msra.mxu0 %vm2578_vm1, %v2253_v27  ;;  %2294 = vmatpush3.bf16.xpose.msk.msra.mxu1 %vm2578_vm1, %v2253_v27  ;;  %p2383_p5 = pnand %p2382_p3, %p2376_p0 }
  0x3a   : > { %1220 = vperm.xlu1 %2362, %v2665_v32   ;;  %1215 = vperm.xlu0 %2361, %v2668_v33  }
  0x3b   : > { %2261 = vmatprep.subr.msk.bf16.mxu0 %vm2578_vm1, %v2259_v34  ;;  %2287 = vmatprep.subr.msk.bf16.mxu1 %vm2578_vm1, %v2259_v34 }
  0x3e   : > { %2363 = vset.pattern.permute.xlu1 %v2454_v38  ;;  %1441 = vperm.xlu0 %2361, %v1011_v35  }
  0x3f   : > { %1256 = vperm.xlu1 %2363, %v2623_v21  }
  0x41   : > { %2264 = vmatpush3.bf16.xpose.msk.msra.mxu0 %vm2578_vm1, %v2259_v34  ;;  %2295 = vmatpush3.bf16.xpose.msk.msra.mxu1 %vm2578_vm1, %v2259_v34 }
  0x42   : > { %1456 = vperm.xlu0 %2361, %v1014_v40   ;;  %2267 = vmatprep.subr.msk.bf16.mxu0 %vm2578_vm1, %v2265_v39 }
  0x43   : > { %1260 = vperm.xlu1 %2363, %v2642_v26   ;;  %2288 = vmatprep.subr.msk.bf16.mxu1 %vm2578_vm1, %v2265_v39 }
  0x46   : > { %1466 = vperm.xlu0 %2361, %v1016_v41  }
  0x47   : > { %1268 = vperm.xlu1 %2363, %v2654_v29  }
  0x49   : > { %2270 = vmatpush3.bf16.xpose.msk.msra.mxu0 %vm2578_vm1, %v2265_v39  ;;  %2296 = vmatpush3.bf16.xpose.msk.msra.mxu1 %vm2578_vm1, %v2265_v39 }
  0x4a   : > { %1566 = vperm.xlu0 %2361, %v2700_v45   ;;  %2273 = vmatprep.subr.msk.bf16.mxu0 %vm2578_vm1, %v2271_v44 }
  0x4b   : > { %1276 = vperm.xlu1 %2363, %v2668_v33   ;;  %2289 = vmatprep.subr.msk.bf16.mxu1 %vm2578_vm1, %v2271_v44 }
  0x4e   : > { %1576 = vperm.xlu0 %2361, %v2711_v46  }
  0x4f   : > { %2364 = vset.pattern.permute.xlu1 %v2455_v50 }
  0x50   : > { %1313 = vperm.xlu1 %2364, %v2626_v22  }
  0x51   : > { %2276 = vmatpush3.bf16.xpose.msk.msra.mxu0 %vm2578_vm1, %v2271_v44  ;;  %2297 = vmatpush3.bf16.xpose.msk.msra.mxu1 %vm2578_vm1, %v2271_v44 }
  0x52   : > { %1586 = vperm.xlu0 %2361, %v2720_v51   ;;  %2279 = vmatprep.subr.msk.bf16.mxu0 %vm2578_vm1, %v2277_v49 }
  0x53   : > { %2290 = vmatprep.subr.msk.bf16.mxu1 %vm2578_vm1, %v2277_v49 }
  0x54   : > { %1321 = vperm.xlu1 %2364, %v2642_v26  }
  0x56   : > { %1596 = vperm.xlu0 %2361, %v2731_v52  }
  0x58   : > { %1325 = vperm.xlu1 %2364, %v2639_v25  }
  0x59   : > { %2282 = vmatpush3.bf16.xpose.msk.msra.mxu0 %vm2578_vm1, %v2277_v49  ;;  %2298 = vmatpush3.bf16.xpose.msk.msra.mxu1 %vm2578_vm1, %v2277_v49 }
  0x5a   : > { %2367 = vset.pattern.permute.xlu0 %v2454_v38 }
  0x5b   : > { %1252 = vperm.xlu0 %2367, %v2626_v22  }
  0x5c   : > { %1333 = vperm.xlu1 %2364, %v2651_v28  }
  0x5f   : > { %1264 = vperm.xlu0 %2367, %v2639_v25  }
  0x60   : > { %1341 = vperm.xlu1 %2364, %v2665_v32   ;;  %2212 = vmatmul.mubr.msk.f32.vlgmr.msra.gmra.mrb[0].mxu0 %vm744_vm0, %v713_v53 }
  0x61   : > { %2224 = vmatmul.mubr.msk.f32.vlgmr.msra.gmra.mrb[0].mxu1 %vm744_vm0, %v721_v54  ;;  %2214 = vmatprep.mubr.msk.f32.mxu0 %vm744_vm0, %v714_v55 }
  0x62   : > { %2226 = vmatprep.mubr.msk.f32.mxu1 %vm744_vm0, %v722_v56 }
  0x63   : > { %1272 = vperm.xlu0 %2367, %v2651_v28  }
  0x64   : > { %2365 = vset.pattern.permute.xlu1 %v2456_v61  ;;  %2215 = vmatmul.mubr.msk.f32.gmra.mrb[2].mxu0 %vm744_vm0, %v715_v57 }
  0x65   : > { %2227 = vmatmul.mubr.msk.f32.gmra.mrb[2].mxu1 %vm744_vm0, %v723_v58  ;;  %1378 = vperm.xlu1 %2365, %v2623_v21  }
  0x66   : > { %2217 = vmatprep.mubr.msk.f32.mxu0 %vm744_vm0, %v716_v59  ;;  %2229 = vmatprep.mubr.msk.f32.mxu1 %vm744_vm0, %v724_v60 }
  0x67   : > { %1280 = vperm.xlu0 %2367, %v2665_v32  }
  0x68   : > { %2218 = vmatmul.mubr.msk.f32.gmra.mrb[4].mxu0 %vm744_vm0, %v717_v62 }
  0x69   : > { %2230 = vmatmul.mubr.msk.f32.gmra.mrb[4].mxu1 %vm744_vm0, %v725_v63  ;;  %1382 = vperm.xlu1 %2365, %v2642_v26  }
  0x6a   : > { %2220 = vmatprep.mubr.msk.f32.mxu0 %vm744_vm0, %v718_v1  ;;  %2232 = vmatprep.mubr.msk.f32.mxu1 %vm744_vm0, %v726_v2 }
  0x6b   : > { %1629 = vperm.xlu0 %2367, %v2700_v45  }
  0x6c   : > { %2221 = vmatmul.mubr.msk.f32.gmra.mrb[6].mxu0 %vm744_vm0, %v719_v3 }
  0x6d   : > { %2233 = vmatmul.mubr.msk.f32.gmra.mrb[6].mxu1 %vm744_vm0, %v727_v4  ;;  %1390 = vperm.xlu1 %2365, %v2654_v29  }
  0x6f   : > { %1641 = vperm.xlu0 %2367, %v2781_v5  }
  0x71   : > { %1398 = vperm.xlu1 %2365, %v2668_v33  }
  0x73   : > { %1649 = vperm.xlu0 %2367, %v2787_v6  }
  0x75   : > { %2366 = vset.pattern.permute.xlu1 %v2453_v0  ;;  %v1027_v0 = vld [vmem:[%s2614_s8 + $0x48] sm:$0xff]  ;;  %s3366_s8 = scalar_lea.hbm %s3433_s6, %s2145_s27 }
  0x76   : > { %1436 = vperm.xlu1 %2366, %v1010_v7  }
  0x77   : > { %1657 = vperm.xlu0 %2367, %v2793_v8  }
  0x7a   : > { %1446 = vperm.xlu1 %2366, %v1012_v9  }
  0x7b   : > { %2369 = vset.pattern.permute.xlu0 %v2455_v50 }
  0x7c   : > { %1317 = vperm.xlu0 %2369, %v2623_v21  }
  0x7e   : > { %1451 = vperm.xlu1 %2366, %v1013_v10  }
  0x80   : > { %1329 = vperm.xlu0 %2369, %v2654_v29  }
  0x82   : > { %1461 = vperm.xlu1 %2366, %v1015_v11  }
  0x84   : > { %1337 = vperm.xlu0 %2369, %v2668_v33  }
  0x86   : > { %1471 = vperm.xlu1 %2366, %v1017_v12  }
  0x88   : > { %1689 = vperm.xlu0 %2369, %v1027_v0  }
  0x8a   : > { %1571 = vperm.xlu1 %2366, %v1027_v0  }
  0x8c   : > { %1701 = vperm.xlu0 %2369, %v2720_v51  }
  0x8e   : > { %1581 = vperm.xlu1 %2366, %v2781_v5  }
  0x90   : > { %1709 = vperm.xlu0 %2369, %v2731_v52  }
  0x92   : > { %1591 = vperm.xlu1 %2366, %v2787_v6  }
  0x94   : > { %2371 = vset.pattern.permute.xlu0 %v2456_v61 }
  0x95   : > { %1374 = vperm.xlu0 %2371, %v2626_v22  }
  0x96   : > { %1601 = vperm.xlu1 %2366, %v2793_v8  }
  0x99   : > { %1386 = vperm.xlu0 %2371, %v2639_v25  }
  0x9a   : > { %2368 = vset.pattern.permute.xlu1 %v2454_v38 }
  0x9b   : > { %1633 = vperm.xlu1 %2368, %v1027_v0  }
  0x9c   : > { %v1052_v14 = vpop.permute.xlu1 %1051  ;;  %v1042_v16 = vpop.permute.xlu0 %1041 }
  0x9d   : > { %v2822_v15 = vmul.f32 %v2819_v13, %v1052_v14  ;;  %1394 = vperm.xlu0 %2371, %v2651_v28   ;;  %v2826_v17 = vmul.f32 %v2819_v13, %v1042_v16 }
  0x9f   : > { %1637 = vperm.xlu1 %2368, %v2711_v46  }
  0xa1   : > { %v1057_v18 = vpop.permute.xlu1 %1056  ;;  %v1047_v19 = vpop.permute.xlu0 %1046  ;;  %1402 = vperm.xlu0 %2371, %v2665_v32  }
  0xa2   : > { %v2831_v20 = vmul.f32 %v2819_v13, %v1057_v18  ;;  %v2834_v21 = vmul.f32 %v2819_v13, %v1047_v19 }
  0xa3   : > { %1645 = vperm.xlu1 %2368, %v2720_v51  }
  0xa5   : > { %v1067_v22 = vpop.permute.xlu1 %1066  ;;  %v1062_v23 = vpop.permute.xlu0 %1061  ;;  %1741 = vperm.xlu0 %2371, %v2700_v45  }
  0xa6   : > { %v2839_v24 = vmul.f32 %v2819_v13, %v1067_v22  ;;  %v2842_v25 = vmul.f32 %v2819_v13, %v1062_v23 }
  0xa7   : > { %1653 = vperm.xlu1 %2368, %v2731_v52  }
  0xa9   : > { %v1077_v26 = vpop.permute.xlu1 %1076  ;;  %v1072_v27 = vpop.permute.xlu0 %1071  ;;  %1753 = vperm.xlu0 %2371, %v2781_v5  }
  0xaa   : > { %v2847_v28 = vmul.f32 %v2819_v13, %v1077_v26  ;;  %v2850_v29 = vmul.f32 %v2819_v13, %v1072_v27 }
  0xab   : > { %2370 = vset.pattern.permute.xlu1 %v2455_v50 }
  0xac   : > { %1685 = vperm.xlu1 %2370, %v2700_v45  }
  0xad   : > { %v2854_v30 = vpop.permute.xlu1 %1190  ;;  %1761 = vperm.xlu0 %2371, %v2787_v6   ;;  %v2857_v31 = vpop.permute.xlu0 %1185 }
  0xb0   : > { %1693 = vperm.xlu1 %2370, %v2711_v46  }
  0xb1   : > { %v2860_v32 = vpop.permute.xlu1 %1200  ;;  %1769 = vperm.xlu0 %2371, %v2793_v8   ;;  %v2863_v33 = vpop.permute.xlu0 %1195 }
  0xb2   : > { %3438 = vst [vmem:[#allocation6_spill] sm:$0xff] %v2860_v32  ;;  %3439 = vst [vmem:[#allocation7_spill] sm:$0xff] %v2863_v33 }
  0xb4   : > { %1697 = vperm.xlu1 %2370, %v2781_v5  }
  0xb5   : > { %v2866_v34 = vpop.permute.xlu1 %1210  ;;  %v2868_v35 = vpop.permute.xlu0 %1205 }
  0xb6   : > { %3440 = vst [vmem:[#allocation8_spill] sm:$0xff] %v2866_v34  ;;  %3441 = vst [vmem:[#allocation9_spill] sm:$0xff] %v2868_v35 }
  0xb8   : > { %1705 = vperm.xlu1 %2370, %v2787_v6  }
  0xb9   : > { %v2871_v36 = vpop.permute.xlu1 %1220  ;;  %v2873_v37 = vpop.permute.xlu0 %1215 }
  0xba   : > { %3442 = vst [vmem:[#allocation10_spill] sm:$0xff] %v2871_v36  ;;  %3443 = vst [vmem:[#allocation11_spill] sm:$0xff] %v2873_v37 }
  0xbc   : > { %1713 = vperm.xlu1 %2370, %v2793_v8  }
  0xbd   : > { %v1442_v38 = vpop.permute.xlu0 %1441 }
  0xbe   : > { %v2877_v39 = vmul.f32 %v2819_v13, %v1442_v38  ;;  %v2879_v40 = vpop.permute.xlu1 %1256 }
  0xc0   : > { %2372 = vset.pattern.permute.xlu1 %v2456_v61 }
  0xc1   : > { %1745 = vperm.xlu1 %2372, %v1027_v0   ;;  %v1457_v41 = vpop.permute.xlu0 %1456  ;;  %v1035_v0 = vlaneseq }
  0xc2   : > { %v2883_v42 = vmul.f32 %v2819_v13, %v1457_v41  ;;  %v2885_v43 = vpop.permute.xlu1 %1260 }
  0xc3   : > { %3444 = vst [vmem:[#allocation12_spill] sm:$0xff] %v2885_v43  ;;  %v2957_v18 = vshrl.u32 %v1035_v0, 7  ;;  %v2963_v23 = vand.u32 127, %v1035_v0 }
  0xc5   : > { %1749 = vperm.xlu1 %2372, %v2711_v46   ;;  %v1467_v44 = vpop.permute.xlu0 %1466  ;;  %v1112_v26 = vadd.s32 16, %v2957_v18  ;;  %v1113_v38 = vadd.s32 24, %v2957_v18  ;;  %v1115_v41 = vadd.s32 40, %v2957_v18  ;;  %v1111_v0 = vadd.s32 8, %v2957_v18 }
  0xc6   : > { %v2889_v45 = vmul.f32 %v2819_v13, %v1467_v44  ;;  %v2891_v47 = vpop.permute.xlu1 %1268  ;;  %v1233_v37 = vsub.s32 0, %v2957_v18  ;;  %v1114_v36 = vadd.s32 32, %v2957_v18  ;;  %vm1127_vm8 = vcmp.gt.s32.totalorder %v2957_v18, %v2963_v23 }
  0xc7   : > { %3445 = vst [vmem:[#allocation13_spill] sm:$0xff] %v2891_v47  ;;  %vm1129_vm2 = vcmp.gt.s32.totalorder %v1112_v26, %v2963_v23  ;;  %vm1130_vm3 = vcmp.gt.s32.totalorder %v1113_v38, %v2963_v23  ;;  %vm1132_vm4 = vcmp.gt.s32.totalorder %v1115_v41, %v2963_v23  ;;  %vm1128_vm6 = vcmp.gt.s32.totalorder %v1111_v0, %v2963_v23 }
  0xc8   : > { %v1502_v34 = vadd.s32 64, %v1112_v26  ;;  %vm1131_vm9 = vcmp.gt.s32.totalorder %v1114_v36, %v2963_v23 }
  0xc9   : > { %1757 = vperm.xlu1 %2372, %v2720_v51   ;;  %v2894_v48 = vpop.permute.xlu0 %1566 }
  0xca   : > { %v2896_v49 = vpop.permute.xlu1 %1276  ;;  %vm1510_vm15 = vcmp.gt.s32.totalorder %v1502_v34, %v2963_v23 }
  0xcb   : > { %3446 = vst [vmem:[#allocation14_spill] sm:$0xff] %v2896_v49 }
  0xcd   : > { %1765 = vperm.xlu1 %2372, %v2731_v52   ;;  %v2899_v50 = vpop.permute.xlu0 %1576 }
  0xce   : > { %3447 = vst [vmem:[#allocation15_spill] sm:$0xff] %v2899_v50 }
  0xcf   : > { %v2901_v53 = vpop.permute.xlu1 %1313 }
  0xd1   : > { %v2903_v54 = vpop.permute.xlu0 %1586 }
  0xd2   : > { %3448 = vst [vmem:[#allocation16_spill] sm:$0xff] %v2903_v54 }
  0xd3   : > { %v2905_v46 = vpop.permute.xlu1 %1321 }
  0xd4   : > { %3449 = vst [vmem:[#allocation17_spill] sm:$0xff] %v2905_v46 }
  0xd5   : > { %v2907_v55 = vpop.permute.xlu0 %1596 }
  0xd6   : > { %3450 = vst [vmem:[#allocation18_spill] sm:$0xff] %v2907_v55  ;;  %v1117_v55 = vadd.s32 56, %v2957_v18 }
  0xd7   : > { %v2909_v56 = vpop.permute.xlu1 %1325 }
  0xd8   : > { %3451 = vst [vmem:[#allocation19_spill] sm:$0xff] %v2909_v56  ;;  %vm1134_vm5 = vcmp.gt.s32.totalorder %v1117_v55, %v2963_v23  ;;  %v1507_v54 = vadd.s32 64, %v1117_v55 }
  0xda   : > { %v2911_v57 = vpop.permute.xlu0 %1252  ;;  %vm1515_vm1 = vcmp.gt.s32.totalorder %v1507_v54, %v2963_v23 }
  0xdb   : > { %v2913_v51 = vpop.permute.xlu1 %1333 }
  0xdc   : > { %3452 = vst [vmem:[#allocation20_spill] sm:$0xff] %v2913_v51 }
  0xde   : > { %v2915_v58 = vpop.permute.xlu0 %1264 }
  0xdf   : > { %3453 = vst [vmem:[#allocation21_spill] sm:$0xff] %v2915_v58  ;;  %v2917_v59 = vpop.permute.xlu1 %1341 }
  0xe0   : > { %3454 = vst [vmem:[#allocation22_spill] sm:$0xff] %v2917_v59  ;;  %v1501_v59 = vadd.s32 64, %v1111_v0 }
  0xe2   : > { %v2919_v52 = vpop.permute.xlu0 %1272  ;;  %vm1509_vm7 = vcmp.gt.s32.totalorder %v1501_v59, %v2963_v23 }
  0xe3   : > { %3455 = vst [vmem:[#allocation23_spill] sm:$0xff] %v2919_v52 }
  0xe4   : > { %v2921_v60 = vpop.permute.xlu1 %1378 }
  0xe6   : > { %v2923_v61 = vpop.permute.xlu0 %1280 }
  0xe7   : > { %3456 = vst [vmem:[#allocation24_spill] sm:$0xff] %v2923_v61 }
  0xe8   : > { %v2925_v62 = vpop.permute.xlu1 %1382 }
  0xe9   : > { %3457 = vst [vmem:[#allocation25_spill] sm:$0xff] %v2925_v62 }
  0xea   : > { %v2927_v63 = vpop.permute.xlu0 %1629 }
  0xec   : > { %v2929_v1 = vpop.permute.xlu1 %1390 }
  0xed   : > { %3458 = vst [vmem:[#allocation26_spill] sm:$0xff] %v2929_v1 }
  0xee   : > { %v2931_v2 = vpop.permute.xlu0 %1641 }
  0xef   : > { %3459 = vst [vmem:[#allocation27_spill] sm:$0xff] %v2931_v2 }
  0xf0   : > { %v2933_v3 = vpop.permute.xlu1 %1398 }
  0xf1   : > { %3460 = vst [vmem:[#allocation28_spill] sm:$0xff] %v2933_v3 }
  0xf2   : > { %v2935_v4 = vpop.permute.xlu0 %1649 }
  0xf3   : > { %3461 = vst [vmem:[#allocation29_spill] sm:$0xff] %v2935_v4  ;;  %v1504_v4 = vadd.s32 64, %v1114_v36 }
  0xf5   : > { %v2937_v5 = vpop.permute.xlu1 %1436  ;;  %vm1512_vm12 = vcmp.gt.s32.totalorder %v1504_v4, %v2963_v23 }
  0xf6   : > { %v2939_v6 = vpop.permute.xlu0 %1657 }
  0xf7   : > { %3462 = vst [vmem:[#allocation30_spill] sm:$0xff] %v2939_v6  ;;  %v1500_v6 = vadd.s32 64, %v2957_v18 }
  0xf9   : > { %v2941_v7 = vpop.permute.xlu1 %1446  ;;  %vm1508_vm11 = vcmp.gt.s32.totalorder %v1500_v6, %v2963_v23 }
  0xfb   : > { %v2943_v8 = vpop.permute.xlu0 %1317 }
  0xfd   : > { %v2945_v9 = vpop.permute.xlu1 %1451 }
  0xff   : > { %v2949_v11 = vpop.permute.xlu0 %1329 }
 0x100   : > { %3463 = vst [vmem:[#allocation31_spill] sm:$0xff] %v2949_v11 }
 0x101   : > { %v2947_v10 = vpop.permute.xlu1 %1461 }
 0x103   : > { %v2953_v14 = vpop.permute.xlu0 %1337 }
 0x104   : > { %3464 = vst [vmem:[#allocation32_spill] sm:$0xff] %v2953_v14  ;;  %v2457_v14 = vmov 0.0  }
 0x105   : > { %v2951_v12 = vpop.permute.xlu1 %1471  ;;  %v2074_v49 = vsel %vm1129_vm2, 1.0, %v2457_v14  ;;  %v2075_v61 = vsel %vm1130_vm3, 1.0, %v2457_v14  ;;  %v2077_v35 = vsel %vm1132_vm4, 1.0, %v2457_v14  ;;  %v2073_v59 = vsel %vm1128_vm6, 1.0, %v2457_v14 }
 0x106   : > { %v2990_v47 = vmul.f32 1e+12, %v2074_v49  ;;  %v2995_v52 = vmul.f32 1e+12, %v2075_v61  ;;  %v1505_v49 = vadd.s32 64, %v1115_v41  ;;  %v2105_v26 = vsel %vm1509_vm7, 1.0, %v2457_v14 }
 0x107   : > { %v2961_v22 = vpop.permute.xlu0 %1689  ;;  %v3005_v50 = vmul.f32 1e+12, %v2077_v35  ;;  %v1034_v35 = vld [vmem:[%s433_s17] sm:$0xf]  ;;  %v2076_v36 = vsel %vm1131_vm9, 1.0, %v2457_v14  ;;  %v2106_v34 = vsel %vm1510_vm15, 1.0, %v2457_v14 }
 0x108   : > { %vm1513_vm0 = vcmp.gt.s32.totalorder %v1505_v49, %v2963_v23  ;;  %v3022_v4 = vmul.f32 1e+12, %v2073_v59  ;;  %v3024_v0 = vmul.f32 1e+12, %v2105_v26  ;;  %v3028_v46 = vmul.f32 1e+12, %v2076_v36 }
 0x109   : > { %v2955_v16 = vpop.permute.xlu1 %1571  ;;  %v2109_v62 = vsel %vm1513_vm0, 1.0, %v2457_v14  ;;  %v2111_v49 = vsel %vm1515_vm1, 1.0, %v2457_v14  ;;  %v1095_v26 = vsub.f32 1.0, %v2822_v15  ;;  %v3047_v36 = vmul.f32 1e+12, %v2106_v34 }
 0x10a   : > { %v1096_v15 = vsub.f32 1.0, %v2831_v20  ;;  %v1477_v34 = vmul.f32 %v2819_v13, %v2945_v9  ;;  %v1483_v9 = vsub.f32 1.0, %v2877_v39 }
 0x10b   : > { %v2970_v44 = vpop.permute.xlu0 %1701  ;;  %v1103_v20 = vmul.f32 1e+12, %v1095_v26 }
 0x10c   : > { %3467 = vst [vmem:[#allocation35_spill] sm:$0xff] %v2970_v44  ;;  %v1503_v44 = vadd.s32 64, %v1113_v38  ;;  %v2072_v38 = vsel %vm1127_vm8, 1.0, %v2457_v14 }
 0x10d   : > { %v2959_v19 = vpop.permute.xlu1 %1581 }
 0x10e   : > { %3465 = vst [vmem:[#allocation33_spill] sm:$0xff] %v2959_v19  ;;  %vm1511_vm14 = vcmp.gt.s32.totalorder %v1503_v44, %v2963_v23 }
 0x10f   : > { %v2986_v1 = vpop.permute.xlu0 %1709  ;;  %v2107_v44 = vsel %vm1511_vm14, 1.0, %v2457_v14 }
 0x110   : > { %3469 = vst [vmem:[#allocation37_spill] sm:$0xff] %v2986_v1  ;;  %v3045_v2 = vmul.f32 1e+12, %v2107_v44  ;;  %v1476_v44 = vmul.f32 %v2819_v13, %v2941_v7  ;;  %v1099_v7 = vsub.f32 1.0, %v2850_v29  ;;  %v3477_v29 = vsub.s32 2, %v2957_v18 }
 0x111   : > { %v2966_v27 = vpop.permute.xlu1 %1591 }
 0x112   : > { %3466 = vst [vmem:[#allocation34_spill] sm:$0xff] %v2966_v27  ;;  %v2079_v27 = vsel %vm1134_vm5, 1.0, %v2457_v14  ;;  %v1484_v58 = vsub.f32 1.0, %v1476_v44  ;;  %v3083_v39 = vrot.slane %v1034_v35, %v3477_v29 }
 0x113   : > { %v3008_v61 = vmul.f32 1e+12, %v2079_v27  ;;  %v2108_v27 = vsel %vm1512_vm12, 1.0, %v2457_v14 }
 0x114   : > { %v3014_v55 = vpop.permute.xlu0 %1374 }
 0x115   : > { %v2974_v3 = vpop.permute.xlu1 %1601 }
 0x116   : > { %3468 = vst [vmem:[#allocation36_spill] sm:$0xff] %v2974_v3  ;;  %v1116_v3 = vadd.s32 48, %v2957_v18 }
 0x118   : > { %v1506_v51 = vadd.s32 64, %v1116_v3  ;;  %vm1133_vm10 = vcmp.gt.s32.totalorder %v1116_v3, %v2963_v23 }
 0x119   : > { %v2078_v3 = vsel %vm1133_vm10, 1.0, %v2457_v14 }
 0x11a   : > { %v2988_v11 = vpop.permute.xlu1 %1633  ;;  %vm1514_vm13 = vcmp.gt.s32.totalorder %v1506_v51, %v2963_v23  ;;  %v2104_v51 = vsel %vm1508_vm11, 1.0, %v2457_v14  ;;  %v3030_v43 = vmul.f32 1e+12, %v2078_v3  ;;  %v3034_v23 = vmul.f32 1e+12, %v2108_v27 }
 0x11b   : > { %v2110_v41 = vsel %vm1514_vm13, 1.0, %v2457_v14  ;;  %v3032_v54 = vmul.f32 1e+12, %v2104_v51  ;;  %v3474_v14 = vsub.s32 1, %v2957_v18  ;;  %v1093_v51 = vsub.f32 1.0, %v2826_v17 }
 0x11c   : > { %v3036_v59 = vmul.f32 1e+12, %v2110_v41  ;;  %v3054_v27 = vmul.f32 1e+12, %v2109_v62  ;;  %v1474_v41 = vmul.f32 %v2819_v13, %v2937_v5  ;;  %v1479_v17 = vmul.f32 %v2819_v13, %v2947_v10 }
 0x11d   : > { %v3051_v3 = vrot.slane %v1034_v35, %v3474_v14  ;;  %v1094_v14 = vsub.f32 1.0, %v2834_v21  ;;  %v1481_v62 = vmul.f32 %v2819_v13, %v2951_v12  ;;  %v1100_v5 = vsub.f32 1.0, %v2847_v28 }
 0x11e   : > { %v3003_v1 = vpop.permute.xlu1 %1637  ;;  %v1101_v19 = vmul.f32 1e+12, %v1093_v51  ;;  %v1486_v21 = vsub.f32 1.0, %v2883_v42  ;;  %v1104_v10 = vmul.f32 1e+12, %v1096_v15  ;;  %v1482_v56 = vsub.f32 1.0, %v1474_v41 }
 0x11f   : > { %3470 = vst [vmem:[#allocation38_spill] sm:$0xff] %v3003_v1  ;;  %v3026_v1 = vmul.f32 1e+12, %v2072_v38  ;;  %v3041_v38 = vpop.permute.xlu0 %1386  ;;  %v1485_v13 = vsub.f32 1.0, %v1477_v34  ;;  %v1487_v28 = vsub.f32 1.0, %v1479_v17  ;;  %v1489_v32 = vsub.f32 1.0, %v1481_v62 }
 0x120   : > { %3472 = vst [vmem:[#allocation40_spill] sm:$0xff] %v3041_v38  ;;  %v1108_v51 = vmul.f32 1e+12, %v1100_v5  ;;  %v1491_v41 = vmul.f32 1e+12, %v1483_v9  ;;  %v3092_v62 = vadd.f32 %v2990_v47, %v1103_v20 }
 0x121   : > { %v1494_v44 = vmul.f32 1e+12, %v1486_v21  ;;  %v1493_v17 = vmul.f32 1e+12, %v1485_v13  ;;  %v1495_v29 = vmul.f32 1e+12, %v1487_v28 }
 0x122   : > { %v3020_v6 = vpop.permute.xlu1 %1645  ;;  %v3107_v47 = vadd.f32 %v3008_v61, %v1108_v51 }
 0x123   : > { %3471 = vst [vmem:[#allocation39_spill] sm:$0xff] %v3020_v6  ;;  %v3038_v6 = vrot.slane %v1034_v35, %v1233_v37  ;;  %v3056_v37 = vmul.f32 1e+12, %v2111_v49  ;;  %v1097_v49 = vsub.f32 1.0, %v2842_v25  ;;  %v3079_v12 = vpop.permute.xlu0 %1394  ;;  %v1102_v25 = vmul.f32 1e+12, %v1094_v14 }
 0x124   : > { %3476 = vst [vmem:[#allocation43_spill] sm:$0xff] %v3079_v12  ;;  %v1492_v14 = vmul.f32 1e+12, %v1484_v58  ;;  %v1543_v9 = vadd.f32 %v3045_v2, %v1493_v17 }
 0x125   : > { %v1105_v42 = vmul.f32 1e+12, %v1097_v49  ;;  %v1497_v49 = vmul.f32 1e+12, %v1489_v32  ;;  %v1160_v5 = vadd.f32 %v3022_v4, %v1102_v25  ;;  %v1541_v4 = vadd.f32 %v3024_v0, %v1491_v41 }
 0x126   : > { %v3043_v33 = vpop.permute.xlu1 %1653  ;;  %v1542_v0 = vadd.f32 %v3047_v36, %v1492_v14 }
 0x127   : > { %3473 = vst [vmem:[#allocation41_spill] sm:$0xff] %v3043_v33  ;;  %v1098_v33 = vsub.f32 1.0, %v2839_v24  ;;  %v1488_v24 = vsub.f32 1.0, %v2889_v45  ;;  %v1107_v45 = vmul.f32 1e+12, %v1099_v7 }
 0x129   : > { %v1106_v26 = vmul.f32 1e+12, %v1098_v33  ;;  %v1496_v34 = vmul.f32 1e+12, %v1488_v24  ;;  %v1490_v33 = vmul.f32 1e+12, %v1482_v56  ;;  %v3104_v56 = vadd.f32 %v3028_v46, %v1105_v42 }
 0x12a   : > { %v3131_v24 = vadd.f32 %v3054_v27, %v1495_v29 }
 0x12b   : > { %v3077_v38 = vpop.permute.xlu1 %1685  ;;  %v3101_v7 = vadd.f32 %v3005_v50, %v1106_v26  ;;  %v3119_v50 = vadd.f32 %v3036_v59, %v1496_v34  ;;  %v1540_v20 = vadd.f32 %v3032_v54, %v1490_v33  ;;  %v3134_v59 = vadd.f32 %v3056_v37, %v1497_v49 }
 0x12c   : > { %3475 = vst [vmem:[#allocation42_spill] sm:$0xff] %v3077_v38  ;;  %v3478_v38 = vsub.s32 3, %v2957_v18  ;;  %v1159_v18 = vadd.f32 %v3026_v1, %v1101_v19  ;;  %v3113_v1 = vadd.f32 %v3034_v23, %v1494_v44  ;;  %v3116_v19 = vadd.f32 %v3030_v43, %v1107_v45 }
 0x12e   : > { %v3087_v15 = vrot.slane %v1034_v35, %v3478_v38  ;;  %v3097_v35 = vpop.permute.xlu0 %1402  ;;  %v1162_v38 = vadd.f32 %v2995_v52, %v1104_v10 }
 0x12f   : > { %v3089_v12 = vpop.permute.xlu1 %1693 }
 0x132   : > { %v1742_v41 = vpop.permute.xlu0 %1741 }
 0x133   : > { %v3109_v58 = vpop.permute.xlu1 %1697  ;;  %v2213_v32 = vpop.f32.mrb[0].mxu0 }
 0x134   : > { %v1176_v46 = vsub.f32 %v2213_v32, %v1160_v5  ;;  %v2225_v52 = vpop.f32.mrb[0].mxu1  ;;  %v907_v61 = vpop.f32.mrb[1].mxu0 }
 0x135   : > { %v3128_v23 = vsub.f32 %v2225_v52, %v1541_v4  ;;  %v1175_v21 = vsub.f32 %v907_v61, %v1159_v18  ;;  %v947_v43 = vpop.f32.mrb[1].mxu1  ;;  %v3479_v52 = vld [vmem:[#allocation42_spill] sm:$0xff] }
 0x136   : > { %v1224_v10 = vadd.f32 %v2854_v30, %v1176_v46  ;;  %v1284_v13 = vadd.f32 %v2879_v40, %v1176_v46  ;;  %v1345_v54 = vadd.f32 %v2943_v8, %v1176_v46  ;;  %v1406_v2 = vadd.f32 %v2921_v60, %v1176_v46 }
 0x137   : > { %v1605_v36 = vadd.f32 %v2955_v16, %v3128_v23  ;;  %v1661_v25 = vadd.f32 %v2988_v11, %v3128_v23  ;;  %v1717_v27 = vadd.f32 %v2961_v22, %v3128_v23  ;;  %v1223_v37 = vadd.f32 %v2857_v31, %v1175_v21  ;;  %v3147_v26 = vpop.permute.xlu1 %1705  ;;  %v2216_v30 = vpop.f32.mrb[2].mxu0 }
 0x138   : > { %v1236_v40 = vadd.f32 %v3038_v6, %v1224_v10  ;;  %v1296_v8 = vadd.f32 %v3051_v3, %v1284_v13  ;;  %v1357_v60 = vadd.f32 %v3083_v39, %v1345_v54  ;;  %v1418_v16 = vadd.f32 %v3087_v15, %v1406_v2  ;;  %v2228_v28 = vpop.f32.mrb[2].mxu1  ;;  %v917_v42 = vpop.f32.mrb[3].mxu0  ;;  %v3481_v10 = vld [vmem:[#allocation21_spill] sm:$0xff]  ;;  %v3482_v13 = vld [vmem:[#allocation19_spill] sm:$0xff]  ;;  %v3483_v2 = vld [vmem:[#allocation40_spill] sm:$0xff] }
 0x139   : > { %v1613_v11 = vadd.f32 %v1605_v36, %v3038_v6  ;;  %v1669_v22 = vadd.f32 %v1661_v25, %v3051_v3  ;;  %v1725_v51 = vadd.f32 %v1717_v27, %v3083_v39  ;;  %v1235_v31 = vadd.f32 %v3038_v6, %v1223_v37  ;;  %v957_v45 = vpop.f32.mrb[3].mxu1 }
 0x13a   : > { %1244 = vst [vmem:[%s3158_s20 + $0x8] sm:$0xff] %v1236_v40  ;;  %2081 = vst [vmem:[%s3158_s20 + $0x88] sm:$0xff] %v1296_v8  ;;  %v1283_v44 = vadd.f32 %v2911_v57, %v1175_v21  ;;  %v1344_v34 = vadd.f32 %v2901_v53, %v1175_v21  ;;  %v1405_v33 = vadd.f32 %v3014_v55, %v1175_v21  ;;  %v1754_v40 = vpop.permute.xlu0 %1753 }
 0x13b   : > { %2089 = vst [vmem:[%s3158_s20 + $0x108] sm:$0xff] %v1357_v60  ;;  %2097 = vst [vmem:[%s3158_s20 + $0x188] sm:$0xff] %v1418_v16  ;;  %v1556_v14 = vsub.f32 %v947_v43, %v1540_v20  ;;  %v1178_v17 = vsub.f32 %v2216_v30, %v1162_v38  ;;  %v1559_v29 = vsub.f32 %v2228_v28, %v1543_v9  ;;  %v3174_v18 = vpop.permute.xlu1 %1713  ;;  %v3176_v57 = vpop.f32.mrb[4].mxu0  ;;  %v3480_v9 = vld [vmem:[#allocation6_spill] sm:$0xff]  ;;  %v3484_v28 = vld [vmem:[#allocation33_spill] sm:$0xff] }
 0x13c   : > { %1621 = vst [vmem:[%s3158_s20 + $0x48] sm:$0xff] %v1613_v11  ;;  %2113 = vst [vmem:[%s3158_s20 + $0xc8] sm:$0xff] %v1669_v22  ;;  %v1177_v49 = vsub.f32 %v917_v42, %v3092_v62  ;;  %v3172_v5 = vsub.f32 %v957_v45, %v1542_v0  ;;  %v1295_v53 = vadd.f32 %v3051_v3, %v1283_v44  ;;  %v2231_v4 = vpop.f32.mrb[4].mxu1  ;;  %v3182_v46 = vpop.f32.mrb[5].mxu0  ;;  %v3485_v22 = vld [vmem:[#allocation27_spill] sm:$0xff] }
 0x13d   : > { %2121 = vst [vmem:[%s3158_s20 + $0x148] sm:$0xff] %v1725_v51  ;;  %1243 = vst [vmem:[%s3158_s20] sm:$0xff] %v1235_v31  ;;  %v1356_v55 = vadd.f32 %v3083_v39, %v1344_v34  ;;  %v1417_v32 = vadd.f32 %v3087_v15, %v1405_v33  ;;  %v1604_v38 = vadd.f32 %v2894_v48, %v1556_v14  ;;  %v967_v21 = vpop.f32.mrb[5].mxu1 }
 0x13e   : > { %v1660_v62 = vadd.f32 %v2927_v63, %v1556_v14  ;;  %v1716_v61 = vadd.f32 %v3479_v52, %v1556_v14  ;;  %v1772_v20 = vadd.f32 %v1742_v41, %v1556_v14  ;;  %v1226_v0 = vadd.f32 %v3480_v9, %v1178_v17  ;;  %2080 = vst [vmem:[%s3158_s20 + $0x80] sm:$0xff] %v1295_v53  ;;  %v3486_v41 = vld [vmem:[#allocation7_spill] sm:$0xff] }
 0x13f   : > { %2088 = vst [vmem:[%s3158_s20 + $0x100] sm:$0xff] %v1356_v55  ;;  %2096 = vst [vmem:[%s3158_s20 + $0x180] sm:$0xff] %v1417_v32  ;;  %v1612_v43 = vadd.f32 %v1604_v38, %v3038_v6  ;;  %v1286_v48 = vadd.f32 %v3481_v10, %v1178_v17  ;;  %v1347_v54 = vadd.f32 %v3482_v13, %v1178_v17  ;;  %v2222_v30 = vpop.f32.mrb[6].mxu0  ;;  %v3488_v55 = vld [vmem:[#allocation17_spill] sm:$0xff] }
 0x140   : > { %v1408_v63 = vadd.f32 %v3483_v2, %v1178_v17  ;;  %v1668_v36 = vadd.f32 %v1660_v62, %v3051_v3  ;;  %v1724_v25 = vadd.f32 %v1716_v61, %v3083_v39  ;;  %v1780_v27 = vadd.f32 %v1772_v20, %v3087_v15  ;;  %v3203_v11 = vpop.f32.mrb[6].mxu1  ;;  %v3212_v34 = vpop.f32.mrb[7].mxu0  ;;  %v3487_v17 = vld [vmem:[#allocation12_spill] sm:$0xff] }
 0x141   : > { %v1238_v37 = vadd.f32 %v3038_v6, %v1226_v0  ;;  %1620 = vst [vmem:[%s3158_s20 + $0x40] sm:$0xff] %v1612_v43  ;;  %v1298_v8 = vadd.f32 %v3051_v3, %v1286_v48  ;;  %v1359_v60 = vadd.f32 %v3083_v39, %v1347_v54  ;;  %v1607_v42 = vadd.f32 %v3484_v28, %v1559_v29  ;;  %v3214_v33 = vpop.f32.mrb[7].mxu1  ;;  %v3223_v38 = vpop.permute.xlu1 %1745  ;;  %v3490_v43 = vld [vmem:[#allocation15_spill] sm:$0xff]  ;;  %v3491_v48 = vld [vmem:[#allocation38_spill] sm:$0xff] }
 0x142   : > { %v1420_v16 = vadd.f32 %v3087_v15, %v1408_v63  ;;  %2112 = vst [vmem:[%s3158_s20 + $0xc0] sm:$0xff] %v1668_v36  ;;  %2120 = vst [vmem:[%s3158_s20 + $0x140] sm:$0xff] %v1724_v25  ;;  %v1663_v51 = vadd.f32 %v3485_v22, %v1559_v29  ;;  %v1719_v31 = vadd.f32 %v3109_v58, %v1559_v29  ;;  %v3495_v28 = vld [vmem:[#allocation43_spill] sm:$0xff] }
 0x143   : > { %2128 = vst [vmem:[%s3158_s20 + $0x1c0] sm:$0xff] %v1780_v27  ;;  %1246 = vst [vmem:[%s3158_s20 + $0x18] sm:$0xff] %v1238_v37  ;;  %v1775_v45 = vadd.f32 %v1754_v40, %v1559_v29  ;;  %v1225_v44 = vadd.f32 %v3486_v41, %v1177_v49  ;;  %v1615_v14 = vadd.f32 %v1607_v42, %v3038_v6  ;;  %v3489_v29 = vld [vmem:[#allocation25_spill] sm:$0xff] }
 0x144   : > { %2083 = vst [vmem:[%s3158_s20 + $0x98] sm:$0xff] %v1298_v8  ;;  %2091 = vst [vmem:[%s3158_s20 + $0x118] sm:$0xff] %v1359_v60  ;;  %v1285_v53 = vadd.f32 %v3487_v17, %v1177_v49  ;;  %v1346_v58 = vadd.f32 %v3488_v55, %v1177_v49  ;;  %v1407_v32 = vadd.f32 %v3489_v29, %v1177_v49  ;;  %v1762_v8 = vpop.permute.xlu0 %1761  ;;  %v3494_v60 = vld [vmem:[#allocation20_spill] sm:$0xff]  ;;  %v3498_v55 = vld [vmem:[#allocation9_spill] sm:$0xff] }
 0x145   : > { %2099 = vst [vmem:[%s3158_s20 + $0x198] sm:$0xff] %v1420_v16  ;;  %v1671_v62 = vadd.f32 %v1663_v51, %v3051_v3  ;;  %v1727_v52 = vadd.f32 %v1719_v31, %v3083_v39  ;;  %v1783_v61 = vadd.f32 %v1775_v45, %v3087_v15  ;;  %v1237_v20 = vadd.f32 %v3038_v6, %v1225_v44 }
 0x146   : > { %1623 = vst [vmem:[%s3158_s20 + $0x58] sm:$0xff] %v1615_v14  ;;  %v1297_v9 = vadd.f32 %v3051_v3, %v1285_v53  ;;  %v1358_v0 = vadd.f32 %v3083_v39, %v1346_v58  ;;  %v1419_v49 = vadd.f32 %v3087_v15, %v1407_v32  ;;  %v1606_v10 = vadd.f32 %v3490_v43, %v3172_v5  ;;  %v3500_v32 = vld [vmem:[#allocation31_spill] sm:$0xff] }
 0x147   : > { %2115 = vst [vmem:[%s3158_s20 + $0xd8] sm:$0xff] %v1671_v62  ;;  %2123 = vst [vmem:[%s3158_s20 + $0x158] sm:$0xff] %v1727_v52  ;;  %v1662_v13 = vadd.f32 %v3491_v48, %v3172_v5  ;;  %v1718_v54 = vadd.f32 %v3089_v12, %v3172_v5  ;;  %v1180_v2 = vsub.f32 %v3176_v57, %v3101_v7  ;;  %v3501_v52 = vld [vmem:[#allocation26_spill] sm:$0xff]  ;;  %v3504_v48 = vld [vmem:[#allocation35_spill] sm:$0xff] }
 0x148   : > { %2131 = vst [vmem:[%s3158_s20 + $0x1d8] sm:$0xff] %v1783_v61  ;;  %1245 = vst [vmem:[%s3158_s20 + $0x10] sm:$0xff] %v1237_v20  ;;  %v1561_v63 = vsub.f32 %v2231_v4, %v3131_v24  ;;  %v1614_v36 = vadd.f32 %v1606_v10, %v3038_v6  ;;  %v1179_v25 = vsub.f32 %v3182_v46, %v3104_v56  ;;  %v3492_v24 = vld [vmem:[#allocation8_spill] sm:$0xff]  ;;  %v3493_v4 = vld [vmem:[#allocation23_spill] sm:$0xff] }
 0x149   : > { %2082 = vst [vmem:[%s3158_s20 + $0x90] sm:$0xff] %v1297_v9  ;;  %2090 = vst [vmem:[%s3158_s20 + $0x110] sm:$0xff] %v1358_v0  ;;  %v3253_v27 = vsub.f32 %v967_v21, %v3113_v1  ;;  %v1182_v12 = vsub.f32 %v2222_v30, %v3107_v47  ;;  %v1670_v37 = vadd.f32 %v1662_v13, %v3051_v3  ;;  %v3496_v1 = vld [vmem:[#allocation34_spill] sm:$0xff]  ;;  %v3497_v21 = vld [vmem:[#allocation29_spill] sm:$0xff]  ;;  %v1750_v30 = vpop.permute.xlu1 %1749 }
 0x14a   : > { %2098 = vst [vmem:[%s3158_s20 + $0x190] sm:$0xff] %v1419_v49  ;;  %v1726_v7 = vadd.f32 %v1718_v54, %v3083_v39  ;;  %v1228_v57 = vadd.f32 %v3492_v24, %v1180_v2  ;;  %v1288_v40 = vadd.f32 %v3493_v4, %v1180_v2  ;;  %1622 = vst [vmem:[%s3158_s20 + $0x50] sm:$0xff] %v1614_v36  ;;  %v3502_v20 = vld [vmem:[#allocation16_spill] sm:$0xff]  ;;  %v3503_v0 = vld [vmem:[#allocation39_spill] sm:$0xff] }
 0x14b   : > { %v1349_v16 = vadd.f32 %v3494_v60, %v1180_v2  ;;  %v1410_v56 = vadd.f32 %v3495_v28, %v1180_v2  ;;  %v1609_v46 = vadd.f32 %v3496_v1, %v1561_v63  ;;  %v1665_v47 = vadd.f32 %v3497_v21, %v1561_v63  ;;  %2114 = vst [vmem:[%s3158_s20 + $0xd0] sm:$0xff] %v1670_v37  ;;  %v3505_v54 = vld [vmem:[#allocation10_spill] sm:$0xff]  ;;  %v3506_v4 = vld [vmem:[#allocation24_spill] sm:$0xff] }
 0x14c   : > { %2122 = vst [vmem:[%s3158_s20 + $0x150] sm:$0xff] %v1726_v7  ;;  %v1240_v42 = vadd.f32 %v3038_v6, %v1228_v57  ;;  %v1300_v22 = vadd.f32 %v3051_v3, %v1288_v40  ;;  %v1721_v51 = vadd.f32 %v3147_v26, %v1561_v63  ;;  %v1777_v31 = vadd.f32 %v1762_v8, %v1561_v63  ;;  %v3499_v26 = vld [vmem:[#allocation13_spill] sm:$0xff]  ;;  %v3507_v8 = vld [vmem:[#allocation22_spill] sm:$0xff] }
 0x14d   : > { %v1361_v45 = vadd.f32 %v3083_v39, %v1349_v16  ;;  %v1422_v41 = vadd.f32 %v3087_v15, %v1410_v56  ;;  %v1617_v44 = vadd.f32 %v1609_v46, %v3038_v6  ;;  %v1673_v14 = vadd.f32 %v1665_v47, %v3051_v3  ;;  %v1758_v7 = vpop.permute.xlu1 %1757  ;;  %v1770_v47 = vpop.permute.xlu0 %1769 }
 0x14e   : > { %1248 = vst [vmem:[%s3158_s20 + $0x28] sm:$0xff] %v1240_v42  ;;  %2085 = vst [vmem:[%s3158_s20 + $0xa8] sm:$0xff] %v1300_v22  ;;  %v1729_v17 = vadd.f32 %v1721_v51, %v3083_v39  ;;  %v1785_v53 = vadd.f32 %v1777_v31, %v3087_v15  ;;  %v1227_v58 = vadd.f32 %v3498_v55, %v1179_v25  ;;  %v3513_v55 = vld [vmem:[#allocation28_spill] sm:$0xff] }
 0x14f   : > { %v1287_v29 = vadd.f32 %v3499_v26, %v1179_v25  ;;  %2093 = vst [vmem:[%s3158_s20 + $0x128] sm:$0xff] %v1361_v45  ;;  %2101 = vst [vmem:[%s3158_s20 + $0x1a8] sm:$0xff] %v1422_v41  ;;  %v1348_v62 = vadd.f32 %v3500_v32, %v1179_v25  ;;  %v1409_v61 = vadd.f32 %v3501_v52, %v1179_v25  ;;  %v3512_v45 = vld [vmem:[#allocation32_spill] sm:$0xff] }
 0x150   : > { %1625 = vst [vmem:[%s3158_s20 + $0x68] sm:$0xff] %v1617_v44  ;;  %2117 = vst [vmem:[%s3158_s20 + $0xe8] sm:$0xff] %v1673_v14  ;;  %v1608_v9 = vadd.f32 %v3502_v20, %v3253_v27  ;;  %v1664_v49 = vadd.f32 %v3503_v0, %v3253_v27  ;;  %v1239_v43 = vadd.f32 %v3038_v6, %v1227_v58 }
 0x151   : > { %2125 = vst [vmem:[%s3158_s20 + $0x168] sm:$0xff] %v1729_v17  ;;  %2133 = vst [vmem:[%s3158_s20 + $0x1e8] sm:$0xff] %v1785_v53  ;;  %v1299_v10 = vadd.f32 %v3051_v3, %v1287_v29  ;;  %v1720_v13 = vadd.f32 %v3504_v48, %v3253_v27  ;;  %v1230_v2 = vadd.f32 %v3505_v54, %v1182_v12  ;;  %v1766_v44 = vpop.permute.xlu1 %1765  ;;  %v3514_v29 = vld [vmem:[#allocation18_spill] sm:$0xff] }
 0x152   : > { %v1360_v63 = vadd.f32 %v3083_v39, %v1348_v62  ;;  %v1421_v36 = vadd.f32 %v3087_v15, %v1409_v61  ;;  %v1616_v25 = vadd.f32 %v1608_v9, %v3038_v6  ;;  %v1672_v37 = vadd.f32 %v1664_v49, %v3051_v3  ;;  %1247 = vst [vmem:[%s3158_s20 + $0x20] sm:$0xff] %v1239_v43  ;;  %v3515_v62 = vld [vmem:[#allocation41_spill] sm:$0xff] }
 0x153   : > { %2084 = vst [vmem:[%s3158_s20 + $0xa0] sm:$0xff] %v1299_v10  ;;  %v1728_v24 = vadd.f32 %v1720_v13, %v3083_v39  ;;  %v1242_v57 = vadd.f32 %v3038_v6, %v1230_v2  ;;  %v1290_v40 = vadd.f32 %v3506_v4, %v1182_v12  ;;  %v1351_v60 = vadd.f32 %v3507_v8, %v1182_v12  ;;  %v3516_v61 = vld [vmem:[#allocation37_spill] sm:$0xff] }
 0x154   : > { %2092 = vst [vmem:[%s3158_s20 + $0x120] sm:$0xff] %v1360_v63  ;;  %2100 = vst [vmem:[%s3158_s20 + $0x1a0] sm:$0xff] %v1421_v36  ;;  %v1412_v16 = vadd.f32 %v3097_v35, %v1182_v12  ;;  %v1563_v28 = vsub.f32 %v3203_v11, %v3134_v59  ;;  %v1773_v56 = vadd.f32 %v3223_v38, %v3128_v23  ;;  %v3508_v11 = vld [vmem:[#allocation36_spill] sm:$0xff]  ;;  %v3509_v38 = vld [vmem:[#allocation30_spill] sm:$0xff] }
 0x155   : > { %1624 = vst [vmem:[%s3158_s20 + $0x60] sm:$0xff] %v1616_v25  ;;  %2116 = vst [vmem:[%s3158_s20 + $0xe0] sm:$0xff] %v1672_v37  ;;  %v1181_v1 = vsub.f32 %v3212_v34, %v3116_v19  ;;  %v1302_v46 = vadd.f32 %v3051_v3, %v1290_v40  ;;  %v1363_v21 = vadd.f32 %v3083_v39, %v1351_v60 }
 0x156   : > { %2124 = vst [vmem:[%s3158_s20 + $0x160] sm:$0xff] %v1728_v24  ;;  %1250 = vst [vmem:[%s3158_s20 + $0x38] sm:$0xff] %v1242_v57  ;;  %v1562_v35 = vsub.f32 %v3214_v33, %v3119_v50  ;;  %v1774_v12 = vadd.f32 %v1750_v30, %v3172_v5  ;;  %v1424_v59 = vadd.f32 %v3087_v15, %v1412_v16  ;;  %v3510_v50 = vld [vmem:[#allocation11_spill] sm:$0xff]  ;;  %v3511_v33 = vld [vmem:[#allocation14_spill] sm:$0xff] }
 0x157   : > { %v1611_v23 = vadd.f32 %v3508_v11, %v1563_v28  ;;  %v1667_v19 = vadd.f32 %v3509_v38, %v1563_v28  ;;  %v1723_v34 = vadd.f32 %v3174_v18, %v1563_v28  ;;  %2087 = vst [vmem:[%s3158_s20 + $0xb8] sm:$0xff] %v1302_v46  ;;  %2095 = vst [vmem:[%s3158_s20 + $0x138] sm:$0xff] %v1363_v21 }
 0x158   : > { %v1779_v42 = vadd.f32 %v1770_v47, %v1563_v28  ;;  %v1781_v22 = vadd.f32 %v1773_v56, %v3087_v15  ;;  %v1229_v5 = vadd.f32 %v3510_v50, %v1181_v1  ;;  %v1289_v30 = vadd.f32 %v3511_v33, %v1181_v1  ;;  %2103 = vst [vmem:[%s3158_s20 + $0x1b8] sm:$0xff] %v1424_v59 }
 0x159   : > { %v1619_v51 = vadd.f32 %v1611_v23, %v3038_v6  ;;  %v1675_v31 = vadd.f32 %v1667_v19, %v3051_v3  ;;  %v1731_v18 = vadd.f32 %v1723_v34, %v3083_v39  ;;  %v1350_v41 = vadd.f32 %v3512_v45, %v1181_v1 }
 0x15a   : > { %v1787_v14 = vadd.f32 %v1779_v42, %v3087_v15  ;;  %2129 = vst [vmem:[%s3158_s20 + $0x1c8] sm:$0xff] %v1781_v22  ;;  %v1241_v17 = vadd.f32 %v3038_v6, %v1229_v5  ;;  %v1301_v53 = vadd.f32 %v3051_v3, %v1289_v30  ;;  %v1411_v58 = vadd.f32 %v3513_v55, %v1181_v1 }
 0x15b   : > { %1627 = vst [vmem:[%s3158_s20 + $0x78] sm:$0xff] %v1619_v51  ;;  %2119 = vst [vmem:[%s3158_s20 + $0xf8] sm:$0xff] %v1675_v31  ;;  %v1362_v26 = vadd.f32 %v3083_v39, %v1350_v41  ;;  %v1610_v32 = vadd.f32 %v3514_v29, %v1562_v35  ;;  %v1666_v52 = vadd.f32 %v3515_v62, %v1562_v35 }
 0x15c   : > { %2127 = vst [vmem:[%s3158_s20 + $0x178] sm:$0xff] %v1731_v18  ;;  %v1722_v20 = vadd.f32 %v3516_v61, %v1562_v35  ;;  %2135 = vst [vmem:[%s3158_s20 + $0x1f8] sm:$0xff] %v1787_v14  ;;  %v1423_v9 = vadd.f32 %v3087_v15, %v1411_v58  ;;  %v1782_v0 = vadd.f32 %v1774_v12, %v3087_v15 }
 0x15d   : > { %1249 = vst [vmem:[%s3158_s20 + $0x30] sm:$0xff] %v1241_v17  ;;  %2086 = vst [vmem:[%s3158_s20 + $0xb0] sm:$0xff] %v1301_v53  ;;  %v1776_v49 = vadd.f32 %v1758_v7, %v3253_v27  ;;  %v1778_v43 = vadd.f32 %v1766_v44, %v1562_v35  ;;  %v1618_v10 = vadd.f32 %v1610_v32, %v3038_v6 }
 0x15e   : > { %2094 = vst [vmem:[%s3158_s20 + $0x130] sm:$0xff] %v1362_v26  ;;  %v1674_v48 = vadd.f32 %v1666_v52, %v3051_v3  ;;  %v1730_v13 = vadd.f32 %v1722_v20, %v3083_v39  ;;  %2102 = vst [vmem:[%s3158_s20 + $0x1b0] sm:$0xff] %v1423_v9 }
 0x15f   : > { %2130 = vst [vmem:[%s3158_s20 + $0x1d0] sm:$0xff] %v1782_v0  ;;  %v1784_v27 = vadd.f32 %v1776_v49, %v3087_v15  ;;  %v1786_v6 = vadd.f32 %v1778_v43, %v3087_v15  ;;  %1626 = vst [vmem:[%s3158_s20 + $0x70] sm:$0xff] %v1618_v10 }
 0x160   : > { %2118 = vst [vmem:[%s3158_s20 + $0xf0] sm:$0xff] %v1674_v48  ;;  %2126 = vst [vmem:[%s3158_s20 + $0x170] sm:$0xff] %v1730_v13 }
 0x161   : > { %2132 = vst [vmem:[%s3158_s20 + $0x1e0] sm:$0xff] %v1784_v27  ;;  %2134 = vst [vmem:[%s3158_s20 + $0x1f0] sm:$0xff] %v1786_v6 }
 0x162   : > { %2386 = shalt.err (!%p2383_p5)
}
 0x163   : > { %s2387_s11 = scalar_lea.hbm %s3366_s8, 8192  ;;  %s2391_s19 = scalar_lea.hbm %s3433_s6, 16384 }
 0x164   : > { %p2388_p6 = scmp.ne.s32.totalorder %s3366_s8, %s2387_s11  ;;  %p2392_p10 = scmp.lt.u32.totalorder %s3366_s8, %s3433_s6 }
 0x165   : > { %p2393_p11 = scmp.lt.u32.totalorder %s2391_s19, %s2387_s11  ;;  %p2395_p13 = scmp.lt.u32.totalorder %s2387_s11, %s3366_s8 }
 0x166   : > { %p2389_p7 = pnand %p2388_p6, %p2536_p4 }
 0x167   : > { %p2394_p12 = por %p2393_p11, %p2392_p10 }
 0x168   : > { %p2390_p9 = pneg %p2389_p7 }
 0x169   : > { %p2396_p0 = por %p2395_p13, %p2394_p12 }
 0x16b   : > { %p2397_p1 = pnand %p2396_p0, %p2390_p9 }
 0x16d   : > { %2400 = shalt.err (!%p2397_p1)
}
 0x16e   : > { %s2459_s24 = smov 128   ;;  %s2460_s30 = smov 8  }
 0x16f   : > { %2299 = dma.vmem_to_hbm [thread:$0]  (%p2536_p4), %s3368_s28, 8192, %s3366_s8, %s3381_s12, %s2459_s24, %s2459_s24, %s2460_s30  }
 0x170 PF: > { %p2305_p2 = scmp.ge.s32.totalorder %s2451_s26, 2  ;;  %s1828_s13 = sand.u32 1, %s2431_s21  }
 0x171   : > { %s1829_s14 = scalar_lea.sflag [#allocation4], %s1828_s13 }
 0x172   : > { %p2302_p3 = pnand %p2305_p2, %p2543_p8 }
 0x174   : > { %2426 = dma.done.wait (!%p2302_p3), %s1829_s14, 8192  }
 0x175   : > { %2428 = vsyncadd (!%p2302_p3), %s1829_s14, 4294959104  ;;  %s19_s26 = sadd.s32 1, %s2451_s26   ;;  %s3517_s21 = smov %s2435_s22 }
 0x176   : > { %p16_p5 = scmp.ge.s32.totalorder %s19_s26, 4   ;;  %s3518_s22 = smov %s2439_s23 }
 0x177   : > { %s3519_s23 = smov %s2549_s10  ;;  %s3520_s24 = smov %s2447_s25 }
 0x178   : > { %s3521_s25 = smov %s3523_s29  ;;  %18 = sbr.rel (!%p16_p5) target bundleno = 4 (0x4), region = 108 }
 0x17f   :  { %1834 = vsyncpa [#allocation4], 1 }
 0x180   :  { %1836 = vsyncpa [#allocation4 + $0x1], 1 }

</bundles_post_ra>
